<compile_context>
chip_gen: v7x
topology: tpu7x:2x2x1
jax: 0.10.0
libtpu: 0.0.40
codegen_flags: <defaults>
</compile_context>

<pallas_src>
import functools

import jax
import jax.numpy as jnp
from jax import lax
from jax.experimental import pallas as pl
from jax.experimental.pallas import tpu as pltpu


# ----------------------------------------------------------------------------
# Pallas kernels
# ----------------------------------------------------------------------------
def _leaky(x):
    return jnp.where(x > 0, x, 0.1 * x)          # nn.LeakyReLU(0.1)


def _conv_kernel(w_ref, p_ref, b_ref, o_ref, *, leaky):
    # (Cout, Kd)bf16 @ (Kd, tm)bf16 -> f32, + bias, optional leaky.  Lane-dense store.
    acc = jnp.dot(w_ref[...], p_ref[...], preferred_element_type=jnp.float32)
    acc = acc + b_ref[...]
    if leaky:
        acc = _leaky(acc)
    o_ref[...] = acc


def _conv_res_kernel(w_ref, p_ref, b_ref, r_ref, o_ref, *, leaky):
    # conv + folded BN + leaky + fused shortcut residual add.
    acc = jnp.dot(w_ref[...], p_ref[...], preferred_element_type=jnp.float32)
    acc = acc + b_ref[...]
    if leaky:
        acc = _leaky(acc)
    o_ref[...] = acc + r_ref[...]


def _yolo_decode(acc, anch, *, C5, OW, OH, inv_w, tile_cols):
    # acc: (A*C5, tile_cols) f32 raw head outputs; columns index (n, oh, ow).
    # Row class c = row % C5, spatial grid from the column index — all computed
    # in-kernel (float trick avoids integer div/rem), anchors via (Cout,1) column.
    rows = lax.broadcasted_iota(jnp.int32, acc.shape, 0).astype(jnp.float32)
    c = rows - C5 * jnp.floor((rows + 0.5) / C5)
    col0 = (pl.program_id(0) * tile_cols).astype(jnp.float32)
    m = lax.broadcasted_iota(jnp.int32, acc.shape, 1).astype(jnp.float32) + col0
    q = jnp.floor((m + 0.5) / OW)
    gx = m - OW * q                                  # ow
    gy = q - OH * jnp.floor((q + 0.5) / OH)          # oh
    g = jnp.where(c < 0.5, gx, gy)
    sig = jax.nn.sigmoid(acc)
    is_xy = c < 1.5
    is_wh = jnp.logical_and(c > 1.5, c < 3.5)
    # PyTorch reference divides both x and y by the feature-map width w.
    xy = (sig + g) * inv_w
    wh = jnp.exp(jnp.where(is_wh, acc, 0.0)) * anch  # exp only where needed (no inf)
    return jnp.where(is_xy, xy, jnp.where(is_wh, wh, sig))


def _conv_yolo_kernel(w_ref, p_ref, b_ref, a_ref, o_ref, *, C5, OW, OH, inv_w, tile_cols):
    # Linear head conv with the YOLO decode fused as the store epilogue.
    acc = jnp.dot(w_ref[...], p_ref[...], preferred_element_type=jnp.float32)
    acc = acc + b_ref[...]
    o_ref[...] = _yolo_decode(acc, a_ref[...], C5=C5, OW=OW, OH=OH,
                              inv_w=inv_w, tile_cols=tile_cols)


def _yolo_kernel(x_ref, a_ref, o_ref, *, C5, OW, OH, inv_w, tile_cols):
    # Standalone decode (only used when the producing conv could not be fused).
    o_ref[...] = _yolo_decode(x_ref[...], a_ref[...], C5=C5, OW=OW, OH=OH,
                              inv_w=inv_w, tile_cols=tile_cols)


# ----------------------------------------------------------------------------
# Pallas wrappers
# ----------------------------------------------------------------------------
def _pick_tile(M):
    # Largest lane-aligned column tile that divides M: minimizes per-grid-step
    # overhead while staying far inside the 32 MiB scoped-VMEM budget (v7x).
    for cand in (2048, 1024, 512, 256, 128):
        if M % cand == 0:
            return cand
    return M


def im2col_cm(x, K, stride, pad):
    # x: (C, N, H, W) -> (C*K*K, N*OH*OW); row index = c*K*K + ki*K + kj.
    # TODO(synk): fuse im2col into the conv kernel (per-tap accumulation over a
    # halo-padded VMEM tile) so the K*K-inflated patch matrix never hits HBM.
    C, N, H, W = x.shape
    OH = (H + 2 * pad - K) // stride + 1
    OW = (W + 2 * pad - K) // stride + 1
    if K == 1 and stride == 1 and pad == 0:
        return x.reshape(C, N * H * W), OH, OW
    xp = jnp.pad(x, ((0, 0), (0, 0), (pad, pad), (pad, pad)))
    taps = []
    for ki in range(K):
        for kj in range(K):
            taps.append(xp[:, :, ki:ki + stride * OH:stride, kj:kj + stride * OW:stride])
    p = jnp.stack(taps, axis=1)                      # (C, K*K, N, OH, OW)
    return p.reshape(C * K * K, N * OH * OW), OH, OW


def conv_block(x, layer, residual=None, yolo=None):
    # x: (Cin, N, H, W) f32.  Returns (Cout, N, OH, OW) f32, or the decoded
    # (N, A, OH, OW, C5) tensor when a YOLO head is fused in.
    K, s, pad = layer['size'], layer['stride'], layer['pad']
    _, N, H, W = x.shape
    w2, bias = layer['w2'], layer['bias2']
    Cout = layer['cout']
    patches, OH, OW = im2col_cm(x.astype(jnp.bfloat16), K, s, pad)  # bf16 MXU inputs
    Kd, M = patches.shape
    tm = _pick_tile(M)

    in_specs = [
        pl.BlockSpec((Cout, Kd), lambda i: (0, 0)),   # bf16 weights (BN scale folded)
        pl.BlockSpec((Kd, tm), lambda i: (0, i)),     # bf16 im2col patches
        pl.BlockSpec((Cout, 1), lambda i: (0, 0)),    # f32 bias column
    ]
    args = [w2, patches, bias]

    if residual is not None:
        kernel = functools.partial(_conv_res_kernel, leaky=layer['leaky'])
        in_specs.append(pl.BlockSpec((Cout, tm), lambda i: (0, i)))
        args.append(residual.reshape(Cout, M))
    elif yolo is not None:
        C5 = yolo['classes'] + 5
        kernel = functools.partial(_conv_yolo_kernel, C5=C5, OW=OW, OH=OH,
                                   inv_w=1.0 / float(OW), tile_cols=tm)
        in_specs.append(pl.BlockSpec((Cout, 1), lambda i: (0, 0)))
        args.append(yolo['anch_col'])
    else:
        kernel = functools.partial(_conv_kernel, leaky=layer['leaky'])

    out = pl.pallas_call(
        kernel,
        out_shape=jax.ShapeDtypeStruct((Cout, M), jnp.float32),
        grid=(M // tm,),
        in_specs=in_specs,
        out_specs=pl.BlockSpec((Cout, tm), lambda i: (0, i)),
        compiler_params=pltpu.CompilerParams(dimension_semantics=("parallel",)),
    )(*args)

    if yolo is not None:
        C5 = yolo['classes'] + 5
        return out.reshape(yolo['A'], C5, N, OH, OW).transpose(2, 0, 3, 4, 1)
    return out.reshape(Cout, N, OH, OW)


def yolo_decode(x, layer):
    # Fallback standalone decode on a (A*C5, N, H, W) activation.
    A, C5 = layer['A'], layer['classes'] + 5
    C, N, H, W = x.shape
    M = N * H * W
    tm = _pick_tile(M)
    kernel = functools.partial(_yolo_kernel, C5=C5, OW=W, OH=H,
                               inv_w=1.0 / float(W), tile_cols=tm)
    out = pl.pallas_call(
        kernel,
        out_shape=jax.ShapeDtypeStruct((C, M), jnp.float32),
        grid=(M // tm,),
        in_specs=[pl.BlockSpec((C, tm), lambda i: (0, i)),
                  pl.BlockSpec((C, 1), lambda i: (0, 0))],
        out_specs=pl.BlockSpec((C, tm), lambda i: (0, i)),
        compiler_params=pltpu.CompilerParams(dimension_semantics=("parallel",)),
    )(x.reshape(C, M), layer['anch_col'])
    return out.reshape(A, C5, N, H, W).transpose(2, 0, 3, 4, 1)


def upsample_nearest(x, factor):
    x = jnp.repeat(x, factor, axis=2)
    return jnp.repeat(x, factor, axis=3)


# ----------------------------------------------------------------------------
# Model construction (mirrors CustomModel.createLayers) + deterministic params
# ----------------------------------------------------------------------------
def create_layers(net_props, layer_props, key):
    channels = int(net_props['channels'])
    layer_out_ch = []
    layers = []
    to_save = []
    for lp in layer_props:
        if lp['type'] == 'convolutional':
            c_in = layer_out_ch[-1] if layer_out_ch else channels
            c_out = int(lp['filters'])
            K = int(lp['size'])
            s = int(lp['stride'])
            pad = (K - 1) // 2
            bn = int(lp.get('batch_normalize', 0)) == 1
            key, k1, k2, k3, k4, k5 = jax.random.split(key, 6)
            w = 0.1 * jax.random.normal(k1, (c_out, c_in, K, K), jnp.float32)
            if bn:
                gamma = 1.0 + 0.1 * jax.random.normal(k2, (c_out,), jnp.float32)
                beta = 0.1 * jax.random.normal(k3, (c_out,), jnp.float32)
                rmean = 0.1 * jax.random.normal(k4, (c_out,), jnp.float32)
                rvar = 1.0 + 0.1 * jnp.abs(jax.random.normal(k5, (c_out,), jnp.float32))
                scale = gamma / jnp.sqrt(rvar + 1e-5)   # eval-mode BN folded
                bias = beta - rmean * scale
            else:
                scale = jnp.ones((c_out,), jnp.float32)
                bias = 0.1 * jax.random.normal(k2, (c_out,), jnp.float32)
            # Fold BN scale into the weights once; keep MXU inputs in bf16,
            # epilogue (bias / leaky / residual / decode) stays f32.
            w2 = (w.reshape(c_out, c_in * K * K) * scale[:, None]).astype(jnp.bfloat16)
            layers.append(dict(type='conv', w2=w2, bias2=bias.reshape(c_out, 1),
                               cout=c_out, size=K, stride=s, pad=pad,
                               leaky=(lp['activation'] == 'leaky')))
            layer_out_ch.append(c_out)
        elif lp['type'] == 'upsample':
            layers.append(dict(type='upsample', stride=int(lp['stride'])))
            layer_out_ch.append(layer_out_ch[-1])
        elif lp['type'] == 'shortcut':
            frm = len(layers) + int(lp['from'])
            to_save.append(frm)
            layers.append(dict(type='shortcut', frm=frm))
            layer_out_ch.append(layer_out_ch[frm])
        elif lp['type'] == 'route':
            rls = [int(l) if int(l) > 0 else len(layers) + int(l)
                   for l in lp['layers'].split(',')]
            to_save += rls
            layers.append(dict(type='route', layers=rls))
            layer_out_ch.append(sum(layer_out_ch[j] for j in rls))
        elif lp['type'] == 'yolo':
            mask = [int(a) for a in lp['mask'].split(',')]
            a_all = [int(a) for a in lp['anchors'].split(',')]
            anchors = jnp.array([[a_all[2 * m], a_all[2 * m + 1]] for m in mask],
                                jnp.float32)
            A = len(mask)
            C5 = int(lp['classes']) + 5
            anch = jnp.ones((A, C5), jnp.float32)           # per-row anchor scale / 416
            anch = anch.at[:, 2].set(anchors[:, 0] / 416.0)
            anch = anch.at[:, 3].set(anchors[:, 1] / 416.0)
            layers.append(dict(type='yolo', anchors=anchors, A=A,
                               classes=int(lp['classes']),
                               anch_col=anch.reshape(A * C5, 1)))
            layer_out_ch.append(0)
    return layers, to_save


def forward(layers, layers_to_save, x_nchw):
    # Inference-mode forward (model.eval()).  Activations kept channel-major.
    x = jnp.transpose(x_nchw, (1, 0, 2, 3))          # (C, N, H, W)
    layer_outputs = {}
    net_outputs = []
    fused_next = None                                # 'shortcut' / 'yolo' already fused
    for i, layer in enumerate(layers):
        t = layer['type']
        if t == 'conv':
            residual, yolo = None, None
            nxt = layers[i + 1] if i + 1 < len(layers) else None
            if nxt is not None and i not in layers_to_save:
                if nxt['type'] == 'shortcut' and nxt['frm'] in layer_outputs:
                    r = layer_outputs[nxt['frm']]
                    _, N_, H_, W_ = x.shape
                    OH_ = (H_ + 2 * layer['pad'] - layer['size']) // layer['stride'] + 1
                    OW_ = (W_ + 2 * layer['pad'] - layer['size']) // layer['stride'] + 1
                    if r.shape == (layer['cout'], N_, OH_, OW_):
                        residual, fused_next = r, 'shortcut'
                elif nxt['type'] == 'yolo' and not layer['leaky']:
                    yolo, fused_next = nxt, 'yolo'
            x = conv_block(x, layer, residual=residual, yolo=yolo)
        elif t == 'upsample':
            x = upsample_nearest(x, layer['stride'])
        elif t == 'shortcut':
            if fused_next == 'shortcut':
                fused_next = None                    # add already fused into the conv
            else:
                x = x + layer_outputs[layer['frm']]  # tiny tensor; plain XLA add
        elif t == 'route':
            if len(layer['layers']) > 1:
                x = jnp.concatenate([layer_outputs[j] for j in layer['layers']], axis=0)
            else:
                x = layer_outputs[layer['layers'][0]]
        elif t == 'yolo':
            if fused_next == 'yolo':
                fused_next = None                    # decode already fused into the conv
            else:
                x = yolo_decode(x, layer)
            net_outputs.append(x)
        if i in layers_to_save:
            layer_outputs[i] = x
    return net_outputs


# TODO(synk): loadBackboneWeights (binary .weights file I/O) and training-mode
# BatchNorm / YoloLayer training branch are intentionally not implemented.

if __name__ == "__main__":
    ANCHORS = "10,14, 23,27, 37,58, 81,82, 135,169, 344,319"
    NET_PROPERTIES = dict(width='416', height='416', channels='4', batch='2',
                          subdivisions='1', learning_rate='0.001',
                          decay='0.0005', momentum='0.9')
    LAYER_PROPERTIES = [
        dict(type='convolutional', filters='8', size='3', stride='1',
             batch_normalize='1', activation='leaky'),                     # 0
        dict(type='convolutional', filters='16', size='3', stride='2',
             batch_normalize='1', activation='leaky'),                     # 1
        dict(type='convolutional', filters='16', size='1', stride='1',
             batch_normalize='1', activation='leaky'),                     # 2
        dict(type='shortcut', **{'from': '-2'}, activation='linear'),      # 3 (adds layer 1)
        dict(type='convolutional', filters='18', size='1', stride='1',
             batch_normalize='0', activation='linear'),                    # 4
        dict(type='yolo', anchors=ANCHORS, mask='3,4,5', classes='1'),     # 5
        dict(type='route', layers='-3'),                                   # 6 -> layer 3
        dict(type='convolutional', filters='8', size='1', stride='1',
             batch_normalize='1', activation='leaky'),                     # 7
        dict(type='upsample', stride='2'),                                 # 8
        dict(type='route', layers='-1,-9'),                                # 9 -> layers 8, 0
        dict(type='convolutional', filters='18', size='3', stride='1',
             batch_normalize='0', activation='linear'),                    # 10
        dict(type='yolo', anchors=ANCHORS, mask='0,1,2', classes='1'),     # 11
    ]

    key = jax.random.PRNGKey(0)
    key, pkey, xkey = jax.random.split(key, 3)
    layers, layers_to_save = create_layers(NET_PROPERTIES, LAYER_PROPERTIES, pkey)

    x = jax.random.normal(xkey, (2, 4, 16, 16), jnp.float32)   # NCHW input

    fwd = jax.jit(lambda inp: forward(layers, layers_to_save, inp))
    outs = jax.block_until_ready(fwd(x))

    assert outs[0].shape == (2, 3, 8, 8, 6), outs[0].shape
    assert outs[1].shape == (2, 3, 16, 16, 6), outs[1].shape
    assert all(bool(jnp.all(jnp.isfinite(o))) for o in outs)
    print("KERNEL_OK")
</pallas_src>

<mosaic_0001>
module attributes {stable_mosaic.version = 11 : i64} {
  func.func @_conv_kernel(%arg0: i32, %arg1: memref<8x36xbf16, #tpu.memory_space<vmem>>, %arg2: memref<36x512xbf16, #tpu.memory_space<vmem>>, %arg3: memref<8x1xf32, #tpu.memory_space<vmem>>, %arg4: memref<8x512xf32, #tpu.memory_space<vmem>>) attributes {dimension_semantics = [#tpu.dimension_semantics<parallel>], iteration_bounds = array<i64: 1>, scalar_prefetch = 0 : i64, scratch_operands = 0 : i64, tpu.core_type = #tpu.core_type<tc>, window_params = [{pipeline_mode = #tpu.pipeline_mode<synchronous>, transform_indices = @transform_0, window_bounds = array<i64: 8, 36>}, {transform_indices = @transform_1, window_bounds = array<i64: 36, 512>}, {pipeline_mode = #tpu.pipeline_mode<synchronous>, transform_indices = @transform_2, window_bounds = array<i64: 8, 1>}, {transform_indices = @transform_3, window_bounds = array<i64: 8, 512>}]} {
    %c0 = arith.constant 0 : index
    %c0_0 = arith.constant 0 : index
    %0 = vector.load %arg1[%c0, %c0_0] : memref<8x36xbf16, #tpu.memory_space<vmem>>, vector<8x36xbf16>
    %c0_1 = arith.constant 0 : index
    %c0_2 = arith.constant 0 : index
    %1 = vector.load %arg2[%c0_1, %c0_2] : memref<36x512xbf16, #tpu.memory_space<vmem>>, vector<36x512xbf16>
    %cst = arith.constant dense<0.000000e+00> : vector<8x512xf32>
    %2 = tpu.matmul %0, %1, %cst {dimension_numbers = #tpu.dot_dimension_numbers<[1], [0], [0], [1], [0, 0, 1, 1], [], []>} : vector<8x36xbf16>, vector<36x512xbf16>, vector<8x512xf32> -> vector<8x512xf32>
    %c0_3 = arith.constant 0 : index
    %c0_4 = arith.constant 0 : index
    %3 = vector.load %arg3[%c0_3, %c0_4] : memref<8x1xf32, #tpu.memory_space<vmem>>, vector<8x1xf32>
    %4 = vector.broadcast %3 : vector<8x1xf32> to vector<8x512xf32>
    %5 = arith.addf %2, %4 : vector<8x512xf32>
    %cst_5 = arith.constant 0.000000e+00 : f32
    %6 = vector.broadcast %cst_5 : f32 to vector<8x512xf32>
    %7 = arith.cmpf ogt, %5, %6 : vector<8x512xf32>
    %cst_6 = arith.constant 1.000000e-01 : f32
    %8 = vector.broadcast %cst_6 : f32 to vector<8x512xf32>
    %9 = arith.mulf %8, %5 : vector<8x512xf32>
    %10 = arith.select %7, %5, %9 : vector<8x512xi1>, vector<8x512xf32>
    %c0_7 = arith.constant 0 : index
    %c0_8 = arith.constant 0 : index
    %11 = vector.load %arg4[%c0_7, %c0_8] : memref<8x512xf32, #tpu.memory_space<vmem>>, vector<8x512xf32>
    tpu.vector_store %arg4[%c0_7, %c0_8], %10 {strides = array<i32>} : memref<8x512xf32, #tpu.memory_space<vmem>>, vector<8x512xf32>,
    return
  }
  func.func @transform_0(%arg0: i32) -> (i32, i32) {
    %c0_i32 = arith.constant 0 : i32
    %c0_i32_0 = arith.constant 0 : i32
    %c0_i32_1 = arith.constant 0 : i32
    return %c0_i32, %c0_i32_0 : i32, i32
  }
  func.func @transform_1(%arg0: i32) -> (i32, i32) {
    %c0_i32 = arith.constant 0 : i32
    %c0_i32_0 = arith.constant 0 : i32
    return %c0_i32, %arg0 : i32, i32
  }
  func.func @transform_2(%arg0: i32) -> (i32, i32) {
    %c0_i32 = arith.constant 0 : i32
    %c0_i32_0 = arith.constant 0 : i32
    %c0_i32_1 = arith.constant 0 : i32
    return %c0_i32, %c0_i32_0 : i32, i32
  }
  func.func @transform_3(%arg0: i32) -> (i32, i32) {
    %c0_i32 = arith.constant 0 : i32
    %c0_i32_0 = arith.constant 0 : i32
    return %c0_i32, %arg0 : i32, i32
  }
}

module attributes {stable_mosaic.version = 11 : i64} {
  func.func @_conv_kernel(%arg0: i32, %arg1: memref<16x72xbf16, #tpu.memory_space<vmem>>, %arg2: memref<72x128xbf16, #tpu.memory_space<vmem>>, %arg3: memref<16x1xf32, #tpu.memory_space<vmem>>, %arg4: memref<16x128xf32, #tpu.memory_space<vmem>>) attributes {dimension_semantics = [#tpu.dimension_semantics<parallel>], iteration_bounds = array<i64: 1>, scalar_prefetch = 0 : i64, scratch_operands = 0 : i64, tpu.core_type = #tpu.core_type<tc>, window_params = [{pipeline_mode = #tpu.pipeline_mode<synchronous>, transform_indices = @transform_0, window_bounds = array<i64: 16, 72>}, {transform_indices = @transform_1, window_bounds = array<i64: 72, 128>}, {pipeline_mode = #tpu.pipeline_mode<synchronous>, transform_indices = @transform_2, window_bounds = array<i64: 16, 1>}, {transform_indices = @transform_3, window_bounds = array<i64: 16, 128>}]} {
    %c0 = arith.constant 0 : index
    %c0_0 = arith.constant 0 : index
    %0 = vector.load %arg1[%c0, %c0_0] : memref<16x72xbf16, #tpu.memory_space<vmem>>, vector<16x72xbf16>
    %c0_1 = arith.constant 0 : index
    %c0_2 = arith.constant 0 : index
    %1 = vector.load %arg2[%c0_1, %c0_2] : memref<72x128xbf16, #tpu.memory_space<vmem>>, vector<72x128xbf16>
    %cst = arith.constant dense<0.000000e+00> : vector<16x128xf32>
    %2 = tpu.matmul %0, %1, %cst {dimension_numbers = #tpu.dot_dimension_numbers<[1], [0], [0], [1], [0, 0, 1, 1], [], []>} : vector<16x72xbf16>, vector<72x128xbf16>, vector<16x128xf32> -> vector<16x128xf32>
    %c0_3 = arith.constant 0 : index
    %c0_4 = arith.constant 0 : index
    %3 = vector.load %arg3[%c0_3, %c0_4] : memref<16x1xf32, #tpu.memory_space<vmem>>, vector<16x1xf32>
    %4 = vector.broadcast %3 : vector<16x1xf32> to vector<16x128xf32>
    %5 = arith.addf %2, %4 : vector<16x128xf32>
    %cst_5 = arith.constant 0.000000e+00 : f32
    %6 = vector.broadcast %cst_5 : f32 to vector<16x128xf32>
    %7 = arith.cmpf ogt, %5, %6 : vector<16x128xf32>
    %cst_6 = arith.constant 1.000000e-01 : f32
    %8 = vector.broadcast %cst_6 : f32 to vector<16x128xf32>
    %9 = arith.mulf %8, %5 : vector<16x128xf32>
    %10 = arith.select %7, %5, %9 : vector<16x128xi1>, vector<16x128xf32>
    %c0_7 = arith.constant 0 : index
    %c0_8 = arith.constant 0 : index
    %11 = vector.load %arg4[%c0_7, %c0_8] : memref<16x128xf32, #tpu.memory_space<vmem>>, vector<16x128xf32>
    tpu.vector_store %arg4[%c0_7, %c0_8], %10 {strides = array<i32>} : memref<16x128xf32, #tpu.memory_space<vmem>>, vector<16x128xf32>,
    return
  }
  func.func @transform_0(%arg0: i32) -> (i32, i32) {
    %c0_i32 = arith.constant 0 : i32
    %c0_i32_0 = arith.constant 0 : i32
    %c0_i32_1 = arith.constant 0 : i32
    return %c0_i32, %c0_i32_0 : i32, i32
  }
  func.func @transform_1(%arg0: i32) -> (i32, i32) {
    %c0_i32 = arith.constant 0 : i32
    %c0_i32_0 = arith.constant 0 : i32
    return %c0_i32, %arg0 : i32, i32
  }
  func.func @transform_2(%arg0: i32) -> (i32, i32) {
    %c0_i32 = arith.constant 0 : i32
    %c0_i32_0 = arith.constant 0 : i32
    %c0_i32_1 = arith.constant 0 : i32
    return %c0_i32, %c0_i32_0 : i32, i32
  }
  func.func @transform_3(%arg0: i32) -> (i32, i32) {
    %c0_i32 = arith.constant 0 : i32
    %c0_i32_0 = arith.constant 0 : i32
    return %c0_i32, %arg0 : i32, i32
  }
}

module attributes {stable_mosaic.version = 11 : i64} {
  func.func @_conv_res_kernel(%arg0: i32, %arg1: memref<16x16xbf16, #tpu.memory_space<vmem>>, %arg2: memref<16x128xbf16, #tpu.memory_space<vmem>>, %arg3: memref<16x1xf32, #tpu.memory_space<vmem>>, %arg4: memref<16x128xf32, #tpu.memory_space<vmem>>, %arg5: memref<16x128xf32, #tpu.memory_space<vmem>>) attributes {dimension_semantics = [#tpu.dimension_semantics<parallel>], iteration_bounds = array<i64: 1>, scalar_prefetch = 0 : i64, scratch_operands = 0 : i64, tpu.core_type = #tpu.core_type<tc>, window_params = [{pipeline_mode = #tpu.pipeline_mode<synchronous>, transform_indices = @transform_0, window_bounds = array<i64: 16, 16>}, {transform_indices = @transform_1, window_bounds = array<i64: 16, 128>}, {pipeline_mode = #tpu.pipeline_mode<synchronous>, transform_indices = @transform_2, window_bounds = array<i64: 16, 1>}, {transform_indices = @transform_3, window_bounds = array<i64: 16, 128>}, {transform_indices = @transform_4, window_bounds = array<i64: 16, 128>}]} {
    %c0 = arith.constant 0 : index
    %c0_0 = arith.constant 0 : index
    %0 = vector.load %arg1[%c0, %c0_0] : memref<16x16xbf16, #tpu.memory_space<vmem>>, vector<16x16xbf16>
    %c0_1 = arith.constant 0 : index
    %c0_2 = arith.constant 0 : index
    %1 = vector.load %arg2[%c0_1, %c0_2] : memref<16x128xbf16, #tpu.memory_space<vmem>>, vector<16x128xbf16>
    %cst = arith.constant dense<0.000000e+00> : vector<16x128xf32>
    %2 = tpu.matmul %0, %1, %cst {dimension_numbers = #tpu.dot_dimension_numbers<[1], [0], [0], [1], [0, 0, 1, 1], [], []>} : vector<16x16xbf16>, vector<16x128xbf16>, vector<16x128xf32> -> vector<16x128xf32>
    %c0_3 = arith.constant 0 : index
    %c0_4 = arith.constant 0 : index
    %3 = vector.load %arg3[%c0_3, %c0_4] : memref<16x1xf32, #tpu.memory_space<vmem>>, vector<16x1xf32>
    %4 = vector.broadcast %3 : vector<16x1xf32> to vector<16x128xf32>
    %5 = arith.addf %2, %4 : vector<16x128xf32>
    %cst_5 = arith.constant 0.000000e+00 : f32
    %6 = vector.broadcast %cst_5 : f32 to vector<16x128xf32>
    %7 = arith.cmpf ogt, %5, %6 : vector<16x128xf32>
    %cst_6 = arith.constant 1.000000e-01 : f32
    %8 = vector.broadcast %cst_6 : f32 to vector<16x128xf32>
    %9 = arith.mulf %8, %5 : vector<16x128xf32>
    %10 = arith.select %7, %5, %9 : vector<16x128xi1>, vector<16x128xf32>
    %c0_7 = arith.constant 0 : index
    %c0_8 = arith.constant 0 : index
    %11 = vector.load %arg4[%c0_7, %c0_8] : memref<16x128xf32, #tpu.memory_space<vmem>>, vector<16x128xf32>
    %12 = arith.addf %10, %11 : vector<16x128xf32>
    %c0_9 = arith.constant 0 : index
    %c0_10 = arith.constant 0 : index
    %13 = vector.load %arg5[%c0_9, %c0_10] : memref<16x128xf32, #tpu.memory_space<vmem>>, vector<16x128xf32>
    tpu.vector_store %arg5[%c0_9, %c0_10], %12 {strides = array<i32>} : memref<16x128xf32, #tpu.memory_space<vmem>>, vector<16x128xf32>,
    return
  }
  func.func @transform_0(%arg0: i32) -> (i32, i32) {
    %c0_i32 = arith.constant 0 : i32
    %c0_i32_0 = arith.constant 0 : i32
    %c0_i32_1 = arith.constant 0 : i32
    return %c0_i32, %c0_i32_0 : i32, i32
  }
  func.func @transform_1(%arg0: i32) -> (i32, i32) {
    %c0_i32 = arith.constant 0 : i32
    %c0_i32_0 = arith.constant 0 : i32
    return %c0_i32, %arg0 : i32, i32
  }
  func.func @transform_2(%arg0: i32) -> (i32, i32) {
    %c0_i32 = arith.constant 0 : i32
    %c0_i32_0 = arith.constant 0 : i32
    %c0_i32_1 = arith.constant 0 : i32
    return %c0_i32, %c0_i32_0 : i32, i32
  }
  func.func @transform_3(%arg0: i32) -> (i32, i32) {
    %c0_i32 = arith.constant 0 : i32
    %c0_i32_0 = arith.constant 0 : i32
    return %c0_i32, %arg0 : i32, i32
  }
  func.func @transform_4(%arg0: i32) -> (i32, i32) {
    %c0_i32 = arith.constant 0 : i32
    %c0_i32_0 = arith.constant 0 : i32
    return %c0_i32, %arg0 : i32, i32
  }
}

module attributes {stable_mosaic.version = 11 : i64} {
  func.func @_conv_kernel(%arg0: i32, %arg1: memref<8x16xbf16, #tpu.memory_space<vmem>>, %arg2: memref<16x128xbf16, #tpu.memory_space<vmem>>, %arg3: memref<8x1xf32, #tpu.memory_space<vmem>>, %arg4: memref<8x128xf32, #tpu.memory_space<vmem>>) attributes {dimension_semantics = [#tpu.dimension_semantics<parallel>], iteration_bounds = array<i64: 1>, scalar_prefetch = 0 : i64, scratch_operands = 0 : i64, tpu.core_type = #tpu.core_type<tc>, window_params = [{pipeline_mode = #tpu.pipeline_mode<synchronous>, transform_indices = @transform_0, window_bounds = array<i64: 8, 16>}, {transform_indices = @transform_1, window_bounds = array<i64: 16, 128>}, {pipeline_mode = #tpu.pipeline_mode<synchronous>, transform_indices = @transform_2, window_bounds = array<i64: 8, 1>}, {transform_indices = @transform_3, window_bounds = array<i64: 8, 128>}]} {
    %c0 = arith.constant 0 : index
    %c0_0 = arith.constant 0 : index
    %0 = vector.load %arg1[%c0, %c0_0] : memref<8x16xbf16, #tpu.memory_space<vmem>>, vector<8x16xbf16>
    %c0_1 = arith.constant 0 : index
    %c0_2 = arith.constant 0 : index
    %1 = vector.load %arg2[%c0_1, %c0_2] : memref<16x128xbf16, #tpu.memory_space<vmem>>, vector<16x128xbf16>
    %cst = arith.constant dense<0.000000e+00> : vector<8x128xf32>
    %2 = tpu.matmul %0, %1, %cst {dimension_numbers = #tpu.dot_dimension_numbers<[1], [0], [0], [1], [0, 0, 1, 1], [], []>} : vector<8x16xbf16>, vector<16x128xbf16>, vector<8x128xf32> -> vector<8x128xf32>
    %c0_3 = arith.constant 0 : index
    %c0_4 = arith.constant 0 : index
    %3 = vector.load %arg3[%c0_3, %c0_4] : memref<8x1xf32, #tpu.memory_space<vmem>>, vector<8x1xf32>
    %4 = vector.broadcast %3 : vector<8x1xf32> to vector<8x128xf32>
    %5 = arith.addf %2, %4 : vector<8x128xf32>
    %cst_5 = arith.constant 0.000000e+00 : f32
    %6 = vector.broadcast %cst_5 : f32 to vector<8x128xf32>
    %7 = arith.cmpf ogt, %5, %6 : vector<8x128xf32>
    %cst_6 = arith.constant 1.000000e-01 : f32
    %8 = vector.broadcast %cst_6 : f32 to vector<8x128xf32>
    %9 = arith.mulf %8, %5 : vector<8x128xf32>
    %10 = arith.select %7, %5, %9 : vector<8x128xi1>, vector<8x128xf32>
    %c0_7 = arith.constant 0 : index
    %c0_8 = arith.constant 0 : index
    %11 = vector.load %arg4[%c0_7, %c0_8] : memref<8x128xf32, #tpu.memory_space<vmem>>, vector<8x128xf32>
    tpu.vector_store %arg4[%c0_7, %c0_8], %10 {strides = array<i32>} : memref<8x128xf32, #tpu.memory_space<vmem>>, vector<8x128xf32>,
    return
  }
  func.func @transform_0(%arg0: i32) -> (i32, i32) {
    %c0_i32 = arith.constant 0 : i32
    %c0_i32_0 = arith.constant 0 : i32
    %c0_i32_1 = arith.constant 0 : i32
    return %c0_i32, %c0_i32_0 : i32, i32
  }
  func.func @transform_1(%arg0: i32) -> (i32, i32) {
    %c0_i32 = arith.constant 0 : i32
    %c0_i32_0 = arith.constant 0 : i32
    return %c0_i32, %arg0 : i32, i32
  }
  func.func @transform_2(%arg0: i32) -> (i32, i32) {
    %c0_i32 = arith.constant 0 : i32
    %c0_i32_0 = arith.constant 0 : i32
    %c0_i32_1 = arith.constant 0 : i32
    return %c0_i32, %c0_i32_0 : i32, i32
  }
  func.func @transform_3(%arg0: i32) -> (i32, i32) {
    %c0_i32 = arith.constant 0 : i32
    %c0_i32_0 = arith.constant 0 : i32
    return %c0_i32, %arg0 : i32, i32
  }
}

module attributes {stable_mosaic.version = 11 : i64} {
  func.func @_conv_yolo_kernel(%arg0: i32, %arg1: memref<18x144xbf16, #tpu.memory_space<vmem>>, %arg2: memref<144x512xbf16, #tpu.memory_space<vmem>>, %arg3: memref<18x1xf32, #tpu.memory_space<vmem>>, %arg4: memref<18x1xf32, #tpu.memory_space<vmem>>, %arg5: memref<18x512xf32, #tpu.memory_space<vmem>>) attributes {dimension_semantics = [#tpu.dimension_semantics<parallel>], iteration_bounds = array<i64: 1>, scalar_prefetch = 0 : i64, scratch_operands = 0 : i64, tpu.core_type = #tpu.core_type<tc>, window_params = [{pipeline_mode = #tpu.pipeline_mode<synchronous>, transform_indices = @transform_0, window_bounds = array<i64: 18, 144>}, {transform_indices = @transform_1, window_bounds = array<i64: 144, 512>}, {pipeline_mode = #tpu.pipeline_mode<synchronous>, transform_indices = @transform_2, window_bounds = array<i64: 18, 1>}, {pipeline_mode = #tpu.pipeline_mode<synchronous>, transform_indices = @transform_3, window_bounds = array<i64: 18, 1>}, {transform_indices = @transform_4, window_bounds = array<i64: 18, 512>}]} {
    %c0 = arith.constant 0 : index
    %c0_0 = arith.constant 0 : index
    %0 = vector.load %arg1[%c0, %c0_0] : memref<18x144xbf16, #tpu.memory_space<vmem>>, vector<18x144xbf16>
    %c0_1 = arith.constant 0 : index
    %c0_2 = arith.constant 0 : index
    %1 = vector.load %arg2[%c0_1, %c0_2] : memref<144x512xbf16, #tpu.memory_space<vmem>>, vector<144x512xbf16>
    %cst = arith.constant dense<0.000000e+00> : vector<18x512xf32>
    %2 = tpu.matmul %0, %1, %cst {dimension_numbers = #tpu.dot_dimension_numbers<[1], [0], [0], [1], [0, 0, 1, 1], [], []>} : vector<18x144xbf16>, vector<144x512xbf16>, vector<18x512xf32> -> vector<18x512xf32>
    %c0_3 = arith.constant 0 : index
    %c0_4 = arith.constant 0 : index
    %3 = vector.load %arg3[%c0_3, %c0_4] : memref<18x1xf32, #tpu.memory_space<vmem>>, vector<18x1xf32>
    %4 = vector.broadcast %3 : vector<18x1xf32> to vector<18x512xf32>
    %5 = arith.addf %2, %4 : vector<18x512xf32>
    %c0_5 = arith.constant 0 : index
    %c0_6 = arith.constant 0 : index
    %6 = vector.load %arg4[%c0_5, %c0_6] : memref<18x1xf32, #tpu.memory_space<vmem>>, vector<18x1xf32>
    %7 = tpu.iota {dimensions = array<i32: 0>} : vector<18x512xi32>
    %8 = arith.sitofp %7 : vector<18x512xi32> to vector<18x512xf32>
    %cst_7 = arith.constant 5.000000e-01 : f32
    %9 = vector.broadcast %cst_7 : f32 to vector<18x512xf32>
    %10 = arith.addf %8, %9 : vector<18x512xf32>
    %cst_8 = arith.constant 6.000000e+00 : f32
    %11 = vector.broadcast %cst_8 : f32 to vector<18x512xf32>
    %12 = arith.divf %10, %11 : vector<18x512xf32>
    %13 = math.floor %12 : vector<18x512xf32>
    %cst_9 = arith.constant 6.000000e+00 : f32
    %14 = vector.broadcast %cst_9 : f32 to vector<18x512xf32>
    %15 = arith.mulf %14, %13 : vector<18x512xf32>
    %16 = arith.subf %8, %15 : vector<18x512xf32>
    %c512_i32 = arith.constant 512 : i32
    %17 = arith.muli %arg0, %c512_i32 : i32
    %18 = arith.sitofp %17 : i32 to f32
    %19 = tpu.iota {dimensions = array<i32: 1>} : vector<18x512xi32>
    %20 = arith.sitofp %19 : vector<18x512xi32> to vector<18x512xf32>
    %21 = vector.broadcast %18 : f32 to vector<18x512xf32>
    %22 = arith.addf %20, %21 : vector<18x512xf32>
    %cst_10 = arith.constant 5.000000e-01 : f32
    %23 = vector.broadcast %cst_10 : f32 to vector<18x512xf32>
    %24 = arith.addf %22, %23 : vector<18x512xf32>
    %cst_11 = arith.constant 1.600000e+01 : f32
    %25 = vector.broadcast %cst_11 : f32 to vector<18x512xf32>
    %26 = arith.divf %24, %25 : vector<18x512xf32>
    %27 = math.floor %26 : vector<18x512xf32>
    %cst_12 = arith.constant 1.600000e+01 : f32
    %28 = vector.broadcast %cst_12 : f32 to vector<18x512xf32>
    %29 = arith.mulf %28, %27 : vector<18x512xf32>
    %30 = arith.subf %22, %29 : vector<18x512xf32>
    %cst_13 = arith.constant 5.000000e-01 : f32
    %31 = vector.broadcast %cst_13 : f32 to vector<18x512xf32>
    %32 = arith.addf %27, %31 : vector<18x512xf32>
    %cst_14 = arith.constant 1.600000e+01 : f32
    %33 = vector.broadcast %cst_14 : f32 to vector<18x512xf32>
    %34 = arith.divf %32, %33 : vector<18x512xf32>
    %35 = math.floor %34 : vector<18x512xf32>
    %cst_15 = arith.constant 1.600000e+01 : f32
    %36 = vector.broadcast %cst_15 : f32 to vector<18x512xf32>
    %37 = arith.mulf %36, %35 : vector<18x512xf32>
    %38 = arith.subf %27, %37 : vector<18x512xf32>
    %cst_16 = arith.constant 5.000000e-01 : f32
    %39 = vector.broadcast %cst_16 : f32 to vector<18x512xf32>
    %40 = arith.cmpf olt, %16, %39 : vector<18x512xf32>
    %41 = arith.select %40, %30, %38 : vector<18x512xi1>, vector<18x512xf32>
    %42 = arith.negf %5 : vector<18x512xf32>
    %43 = math.exp %42 : vector<18x512xf32>
    %cst_17 = arith.constant 1.000000e+00 : f32
    %44 = vector.broadcast %cst_17 : f32 to vector<18x512xf32>
    %45 = arith.addf %44, %43 : vector<18x512xf32>
    %46 = arith.divf %44, %45 : vector<18x512xf32>
    %cst_18 = arith.constant 1.500000e+00 : f32
    %47 = vector.broadcast %cst_18 : f32 to vector<18x512xf32>
    %48 = arith.cmpf olt, %16, %47 : vector<18x512xf32>
    %cst_19 = arith.constant 1.500000e+00 : f32
    %49 = vector.broadcast %cst_19 : f32 to vector<18x512xf32>
    %50 = arith.cmpf ogt, %16, %49 : vector<18x512xf32>
    %cst_20 = arith.constant 3.500000e+00 : f32
    %51 = vector.broadcast %cst_20 : f32 to vector<18x512xf32>
    %52 = arith.cmpf olt, %16, %51 : vector<18x512xf32>
    %53 = arith.andi %50, %52 : vector<18x512xi1>
    %54 = arith.addf %46, %41 : vector<18x512xf32>
    %cst_21 = arith.constant 6.250000e-02 : f32
    %55 = vector.broadcast %cst_21 : f32 to vector<18x512xf32>
    %56 = arith.mulf %54, %55 : vector<18x512xf32>
    %cst_22 = arith.constant 0.000000e+00 : f32
    %57 = vector.broadcast %cst_22 : f32 to vector<18x512xf32>
    %58 = arith.select %53, %5, %57 : vector<18x512xi1>, vector<18x512xf32>
    %59 = math.exp %58 : vector<18x512xf32>
    %60 = vector.broadcast %6 : vector<18x1xf32> to vector<18x512xf32>
    %61 = arith.mulf %59, %60 : vector<18x512xf32>
    %62 = arith.select %53, %61, %46 : vector<18x512xi1>, vector<18x512xf32>
    %63 = arith.select %48, %56, %62 : vector<18x512xi1>, vector<18x512xf32>
    %c0_23 = arith.constant 0 : index
    %c0_24 = arith.constant 0 : index
    %64 = vector.load %arg5[%c0_23, %c0_24] : memref<18x512xf32, #tpu.memory_space<vmem>>, vector<18x512xf32>
    tpu.vector_store %arg5[%c0_23, %c0_24], %63 {strides = array<i32>} : memref<18x512xf32, #tpu.memory_space<vmem>>, vector<18x512xf32>,
    return
  }
  func.func @transform_0(%arg0: i32) -> (i32, i32) {
    %c0_i32 = arith.constant 0 : i32
    %c0_i32_0 = arith.constant 0 : i32
    %c0_i32_1 = arith.constant 0 : i32
    return %c0_i32, %c0_i32_0 : i32, i32
  }
  func.func @transform_1(%arg0: i32) -> (i32, i32) {
    %c0_i32 = arith.constant 0 : i32
    %c0_i32_0 = arith.constant 0 : i32
    return %c0_i32, %arg0 : i32, i32
  }
  func.func @transform_2(%arg0: i32) -> (i32, i32) {
    %c0_i32 = arith.constant 0 : i32
    %c0_i32_0 = arith.constant 0 : i32
    %c0_i32_1 = arith.constant 0 : i32
    return %c0_i32, %c0_i32_0 : i32, i32
  }
  func.func @transform_3(%arg0: i32) -> (i32, i32) {
    %c0_i32 = arith.constant 0 : i32
    %c0_i32_0 = arith.constant 0 : i32
    %c0_i32_1 = arith.constant 0 : i32
    return %c0_i32, %c0_i32_0 : i32, i32
  }
  func.func @transform_4(%arg0: i32) -> (i32, i32) {
    %c0_i32 = arith.constant 0 : i32
    %c0_i32_0 = arith.constant 0 : i32
    return %c0_i32, %arg0 : i32, i32
  }
}

module attributes {stable_mosaic.version = 11 : i64} {
  func.func @_conv_yolo_kernel(%arg0: i32, %arg1: memref<18x16xbf16, #tpu.memory_space<vmem>>, %arg2: memref<16x128xbf16, #tpu.memory_space<vmem>>, %arg3: memref<18x1xf32, #tpu.memory_space<vmem>>, %arg4: memref<18x1xf32, #tpu.memory_space<vmem>>, %arg5: memref<18x128xf32, #tpu.memory_space<vmem>>) attributes {dimension_semantics = [#tpu.dimension_semantics<parallel>], iteration_bounds = array<i64: 1>, scalar_prefetch = 0 : i64, scratch_operands = 0 : i64, tpu.core_type = #tpu.core_type<tc>, window_params = [{pipeline_mode = #tpu.pipeline_mode<synchronous>, transform_indices = @transform_0, window_bounds = array<i64: 18, 16>}, {transform_indices = @transform_1, window_bounds = array<i64: 16, 128>}, {pipeline_mode = #tpu.pipeline_mode<synchronous>, transform_indices = @transform_2, window_bounds = array<i64: 18, 1>}, {pipeline_mode = #tpu.pipeline_mode<synchronous>, transform_indices = @transform_3, window_bounds = array<i64: 18, 1>}, {transform_indices = @transform_4, window_bounds = array<i64: 18, 128>}]} {
    %c0 = arith.constant 0 : index
    %c0_0 = arith.constant 0 : index
    %0 = vector.load %arg1[%c0, %c0_0] : memref<18x16xbf16, #tpu.memory_space<vmem>>, vector<18x16xbf16>
    %c0_1 = arith.constant 0 : index
    %c0_2 = arith.constant 0 : index
    %1 = vector.load %arg2[%c0_1, %c0_2] : memref<16x128xbf16, #tpu.memory_space<vmem>>, vector<16x128xbf16>
    %cst = arith.constant dense<0.000000e+00> : vector<18x128xf32>
    %2 = tpu.matmul %0, %1, %cst {dimension_numbers = #tpu.dot_dimension_numbers<[1], [0], [0], [1], [0, 0, 1, 1], [], []>} : vector<18x16xbf16>, vector<16x128xbf16>, vector<18x128xf32> -> vector<18x128xf32>
    %c0_3 = arith.constant 0 : index
    %c0_4 = arith.constant 0 : index
    %3 = vector.load %arg3[%c0_3, %c0_4] : memref<18x1xf32, #tpu.memory_space<vmem>>, vector<18x1xf32>
    %4 = vector.broadcast %3 : vector<18x1xf32> to vector<18x128xf32>
    %5 = arith.addf %2, %4 : vector<18x128xf32>
    %c0_5 = arith.constant 0 : index
    %c0_6 = arith.constant 0 : index
    %6 = vector.load %arg4[%c0_5, %c0_6] : memref<18x1xf32, #tpu.memory_space<vmem>>, vector<18x1xf32>
    %7 = tpu.iota {dimensions = array<i32: 0>} : vector<18x128xi32>
    %8 = arith.sitofp %7 : vector<18x128xi32> to vector<18x128xf32>
    %cst_7 = arith.constant 5.000000e-01 : f32
    %9 = vector.broadcast %cst_7 : f32 to vector<18x128xf32>
    %10 = arith.addf %8, %9 : vector<18x128xf32>
    %cst_8 = arith.constant 6.000000e+00 : f32
    %11 = vector.broadcast %cst_8 : f32 to vector<18x128xf32>
    %12 = arith.divf %10, %11 : vector<18x128xf32>
    %13 = math.floor %12 : vector<18x128xf32>
    %cst_9 = arith.constant 6.000000e+00 : f32
    %14 = vector.broadcast %cst_9 : f32 to vector<18x128xf32>
    %15 = arith.mulf %14, %13 : vector<18x128xf32>
    %16 = arith.subf %8, %15 : vector<18x128xf32>
    %c128_i32 = arith.constant 128 : i32
    %17 = arith.muli %arg0, %c128_i32 : i32
    %18 = arith.sitofp %17 : i32 to f32
    %19 = tpu.iota {dimensions = array<i32: 1>} : vector<18x128xi32>
    %20 = arith.sitofp %19 : vector<18x128xi32> to vector<18x128xf32>
    %21 = vector.broadcast %18 : f32 to vector<18x128xf32>
    %22 = arith.addf %20, %21 : vector<18x128xf32>
    %cst_10 = arith.constant 5.000000e-01 : f32
    %23 = vector.broadcast %cst_10 : f32 to vector<18x128xf32>
    %24 = arith.addf %22, %23 : vector<18x128xf32>
    %cst_11 = arith.constant 8.000000e+00 : f32
    %25 = vector.broadcast %cst_11 : f32 to vector<18x128xf32>
    %26 = arith.divf %24, %25 : vector<18x128xf32>
    %27 = math.floor %26 : vector<18x128xf32>
    %cst_12 = arith.constant 8.000000e+00 : f32
    %28 = vector.broadcast %cst_12 : f32 to vector<18x128xf32>
    %29 = arith.mulf %28, %27 : vector<18x128xf32>
    %30 = arith.subf %22, %29 : vector<18x128xf32>
    %cst_13 = arith.constant 5.000000e-01 : f32
    %31 = vector.broadcast %cst_13 : f32 to vector<18x128xf32>
    %32 = arith.addf %27, %31 : vector<18x128xf32>
    %cst_14 = arith.constant 8.000000e+00 : f32
    %33 = vector.broadcast %cst_14 : f32 to vector<18x128xf32>
    %34 = arith.divf %32, %33 : vector<18x128xf32>
    %35 = math.floor %34 : vector<18x128xf32>
    %cst_15 = arith.constant 8.000000e+00 : f32
    %36 = vector.broadcast %cst_15 : f32 to vector<18x128xf32>
    %37 = arith.mulf %36, %35 : vector<18x128xf32>
    %38 = arith.subf %27, %37 : vector<18x128xf32>
    %cst_16 = arith.constant 5.000000e-01 : f32
    %39 = vector.broadcast %cst_16 : f32 to vector<18x128xf32>
    %40 = arith.cmpf olt, %16, %39 : vector<18x128xf32>
    %41 = arith.select %40, %30, %38 : vector<18x128xi1>, vector<18x128xf32>
    %42 = arith.negf %5 : vector<18x128xf32>
    %43 = math.exp %42 : vector<18x128xf32>
    %cst_17 = arith.constant 1.000000e+00 : f32
    %44 = vector.broadcast %cst_17 : f32 to vector<18x128xf32>
    %45 = arith.addf %44, %43 : vector<18x128xf32>
    %46 = arith.divf %44, %45 : vector<18x128xf32>
    %cst_18 = arith.constant 1.500000e+00 : f32
    %47 = vector.broadcast %cst_18 : f32 to vector<18x128xf32>
    %48 = arith.cmpf olt, %16, %47 : vector<18x128xf32>
    %cst_19 = arith.constant 1.500000e+00 : f32
    %49 = vector.broadcast %cst_19 : f32 to vector<18x128xf32>
    %50 = arith.cmpf ogt, %16, %49 : vector<18x128xf32>
    %cst_20 = arith.constant 3.500000e+00 : f32
    %51 = vector.broadcast %cst_20 : f32 to vector<18x128xf32>
    %52 = arith.cmpf olt, %16, %51 : vector<18x128xf32>
    %53 = arith.andi %50, %52 : vector<18x128xi1>
    %54 = arith.addf %46, %41 : vector<18x128xf32>
    %cst_21 = arith.constant 1.250000e-01 : f32
    %55 = vector.broadcast %cst_21 : f32 to vector<18x128xf32>
    %56 = arith.mulf %54, %55 : vector<18x128xf32>
    %cst_22 = arith.constant 0.000000e+00 : f32
    %57 = vector.broadcast %cst_22 : f32 to vector<18x128xf32>
    %58 = arith.select %53, %5, %57 : vector<18x128xi1>, vector<18x128xf32>
    %59 = math.exp %58 : vector<18x128xf32>
    %60 = vector.broadcast %6 : vector<18x1xf32> to vector<18x128xf32>
    %61 = arith.mulf %59, %60 : vector<18x128xf32>
    %62 = arith.select %53, %61, %46 : vector<18x128xi1>, vector<18x128xf32>
    %63 = arith.select %48, %56, %62 : vector<18x128xi1>, vector<18x128xf32>
    %c0_23 = arith.constant 0 : index
    %c0_24 = arith.constant 0 : index
    %64 = vector.load %arg5[%c0_23, %c0_24] : memref<18x128xf32, #tpu.memory_space<vmem>>, vector<18x128xf32>
    tpu.vector_store %arg5[%c0_23, %c0_24], %63 {strides = array<i32>} : memref<18x128xf32, #tpu.memory_space<vmem>>, vector<18x128xf32>,
    return
  }
  func.func @transform_0(%arg0: i32) -> (i32, i32) {
    %c0_i32 = arith.constant 0 : i32
    %c0_i32_0 = arith.constant 0 : i32
    %c0_i32_1 = arith.constant 0 : i32
    return %c0_i32, %c0_i32_0 : i32, i32
  }
  func.func @transform_1(%arg0: i32) -> (i32, i32) {
    %c0_i32 = arith.constant 0 : i32
    %c0_i32_0 = arith.constant 0 : i32
    return %c0_i32, %arg0 : i32, i32
  }
  func.func @transform_2(%arg0: i32) -> (i32, i32) {
    %c0_i32 = arith.constant 0 : i32
    %c0_i32_0 = arith.constant 0 : i32
    %c0_i32_1 = arith.constant 0 : i32
    return %c0_i32, %c0_i32_0 : i32, i32
  }
  func.func @transform_3(%arg0: i32) -> (i32, i32) {
    %c0_i32 = arith.constant 0 : i32
    %c0_i32_0 = arith.constant 0 : i32
    %c0_i32_1 = arith.constant 0 : i32
    return %c0_i32, %c0_i32_0 : i32, i32
  }
  func.func @transform_4(%arg0: i32) -> (i32, i32) {
    %c0_i32 = arith.constant 0 : i32
    %c0_i32_0 = arith.constant 0 : i32
    return %c0_i32, %arg0 : i32, i32
  }
}

</mosaic_0001>

<bundles_post_ra>
// kernel: _lambda_.6
= control target key start
LH: loop header
LB: loop body
LE: loop exit
PB: predicated region body
PF: predicated region fallthrough
CT: control target
= control target key end

     0   :  { %v235_v1 = vmov 0   ;;  %vm86_vm0 = vcmask 1041408   ;;  %vm82_vm1 = vcmask 293888   ;;  %s308_s1 = inlined_call_operand.vmem [shape: bf16[36,512], index: 1, kind: input, shape index: {}]   ;;  %s309_s2 = inlined_call_operand.vmem [shape: f32[8,1], index: 2, kind: input, shape index: {}]   ;;  %s310_s0 = inlined_call_operand.vmem [shape: bf16[8,36], index: 0, kind: input, shape index: {}]   ;;  %s311_s3 = inlined_call_operand.vmem [shape: f32[8,512], index: 3, kind: output, shape index: {}]  }
   0x1   :  { %v219_v0 = vld [vmem:[%s308_s1 + $0x4] ss:$16 sps:$4 sm:$0xff]   ;;  %131 = vmatprep.mubr.bf16.mxu0 %v235_v1  ;;  %172 = vmatprep.mubr.bf16.mxu1 %v235_v1  ;;  %v221_v2 = vld [vmem:[%s308_s1 + $0xc] ss:$16 sps:$4 sm:$0xff]   ;;  %v223_v3 = vld [vmem:[%s308_s1] ss:$16 sps:$4 sm:$0xff]  }
   0x2   :  { %218 = vset.pattern.permute.xlu0 %v235_v1  ;;  %99 = vmatprep.subr.bf16.mxu0 %v219_v0  ;;  %v224_v4 = vld [vmem:[%s308_s1 + $0x8] ss:$16 sps:$4 sm:$0xff]   ;;  %v225_v5 = vld [vmem:[%s308_s1 + $0x24] ss:$16 sps:$4 sm:$0xff]   ;;  %v227_v6 = vld [vmem:[%s308_s1 + $0x2c] ss:$16 sps:$4 sm:$0xff]  }
   0x3   :  { %140 = vmatprep.subr.bf16.mxu1 %v221_v2  ;;  %100 = vmatpush1.bf16.msra.mxu0 %v223_v3  ;;  %v229_v7 = vld [vmem:[%s308_s1 + $0x20] ss:$16 sps:$4 sm:$0xff]   ;;  %v230_v8 = vld [vmem:[%s308_s1 + $0x28] ss:$16 sps:$4 sm:$0xff]  }
   0x4   :  { %141 = vmatpush1.bf16.msra.mxu1 %v224_v4  ;;  %101 = vmatprep.subr.bf16.mxu0 %v225_v5  ;;  %v24_v9 = vld [vmem:[%s308_s1 + $0x40] sm:$0x33]  ;;  %v25_v10 = vld [vmem:[%s308_s1 + $0x48] sm:$0x33] }
   0x5   :  { %142 = vmatprep.subr.bf16.mxu1 %v227_v6  ;;  %v210_v11 = vcombine.high %v24_v9, %v24_v9  ;;  %v212_v12 = vcombine.high %v25_v10, %v25_v10  ;;  %v209_v13 = vcombine.low %v24_v9, %v24_v9  ;;  %v211_v14 = vcombine.low %v25_v10, %v25_v10  ;;  %v26_v15 = vld [vmem:[%s309_s2] sm:$0xff] }
   0x6   :  { %29 = vperm.xlu0 %218, %v26_v15   ;;  %v15_v18 = vld [vmem:[%s310_s0] sm:$0xf] }
   0x7   :  { %102 = vmatpush1.bf16.msra.mxu0 %v229_v7  ;;  %v88_v16 = vsel %vm86_vm0, %v209_v13, 0  ;;  %v94_v17 = vsel %vm86_vm0, %v211_v14, 0 }
   0x8   :  { %143 = vmatpush1.bf16.msra.mxu1 %v230_v8  ;;  %213 = vmatprep.subr.msk.bf16.mxu0 %vm86_vm0, %v210_v11 }
   0x9   :  { %215 = vmatprep.subr.msk.bf16.mxu1 %vm86_vm0, %v212_v12 }
   0xb   :  { %104 = vmatpush1.bf16.msra.mxu0 %v88_v16 }
   0xc   :  { %145 = vmatpush1.bf16.msra.mxu1 %v94_v17 }
   0xe   :  { %214 = vmatmul.mubr.msk.bf16.vlgmr.msra.gmra.mrb[0].mxu0 %vm82_vm1, %v15_v18 }
   0xf   :  { %216 = vmatmul.mubr.msk.bf16.vlgmr.msra.gmra.mrb[0].mxu1 %vm82_vm1, %v15_v18 }
  0x85   :  { %v30_v19 = vpop.permute.xlu0 %29 }
  0xe1   :  { %v133_v20 = vpop.f32.mrb[0].mxu0 }
  0xe2   :  { %v174_v21 = vpop.f32.mrb[0].mxu1  ;;  %v134_v22 = vadd.f32 %v133_v20, %v30_v19  ;;  %v135_v24 = vpop.f32.mrb[1].mxu0 }
  0xe3   :  { %v175_v23 = vadd.f32 %v174_v21, %v30_v19  ;;  %v176_v25 = vpop.f32.mrb[1].mxu1  ;;  %v136_v26 = vadd.f32 %v135_v24, %v30_v19  ;;  %v137_v28 = vpop.f32.mrb[2].mxu0 }
  0xe4   :  { %v177_v27 = vadd.f32 %v176_v25, %v30_v19  ;;  %v178_v29 = vpop.f32.mrb[2].mxu1  ;;  %vm181_vm2 = vcmp.gt.f32.partialorder %v134_v22, 0.0  ;;  %v185_v30 = vmul.f32 0.1, %v134_v22  ;;  %v138_v36 = vpop.f32.mrb[3].mxu0 }
  0xe5   :  { %vm183_vm3 = vcmp.gt.f32.partialorder %v175_v23, 0.0  ;;  %v187_v31 = vmul.f32 0.1, %v175_v23  ;;  %vm182_vm4 = vcmp.gt.f32.partialorder %v136_v26, 0.0  ;;  %v186_v32 = vmul.f32 0.1, %v136_v26 }
  0xe6   :  { %vm184_vm5 = vcmp.gt.f32.partialorder %v177_v27, 0.0  ;;  %v188_v33 = vmul.f32 0.1, %v177_v27  ;;  %v189_v34 = vsel %vm181_vm2, %v134_v22, %v185_v30  ;;  %v179_v37 = vpop.f32.mrb[3].mxu1 }
  0xe7   :  { %v191_v35 = vsel %vm183_vm3, %v175_v23, %v187_v31  ;;  %193 = vst [vmem:[%s311_s3] sm:$0xff] %v189_v34  ;;  %v190_v38 = vsel %vm182_vm4, %v136_v26, %v186_v32 }
  0xe8   :  { %195 = vst [vmem:[%s311_s3 + $0x10] sm:$0xff] %v191_v35  ;;  %v192_v39 = vsel %vm184_vm5, %v177_v27, %v188_v33  ;;  %194 = vst [vmem:[%s311_s3 + $0x8] sm:$0xff] %v190_v38 }
  0xe9   :  { %196 = vst [vmem:[%s311_s3 + $0x18] sm:$0xff] %v192_v39 }

// kernel: _lambda_.7
= control target key start
LH: loop header
LB: loop body
LE: loop exit
PB: predicated region body
PF: predicated region fallthrough
CT: control target
= control target key end

     0   :  { %v168_v0 = vmov 0.0   ;;  %vm169_vm0 = vmmov 0   ;;  %v170_v2 = vmov 0   ;;  %vm74_vm1 = vcmask 1043456   ;;  %s221_s1 = inlined_call_operand.vmem [shape: bf16[72,128], index: 1, kind: input, shape index: {}]   ;;  %s222_s2 = inlined_call_operand.vmem [shape: f32[16,1], index: 2, kind: input, shape index: {}]   ;;  %s223_s0 = inlined_call_operand.vmem [shape: bf16[16,72], index: 0, kind: input, shape index: {}]   ;;  %s224_s3 = inlined_call_operand.vmem [shape: f32[16,128], index: 3, kind: output, shape index: {}]  }
   0x1   :  { %144 = vmatprep.subr.bf16.mxu0 %v168_v0  ;;  %v162_v1 = vld [vmem:[%s221_s1] sm:$0xff]   ;;  %154 = vmatprep.mubr.msk.bf16.mxu0 %vm169_vm0, %v168_v0  ;;  %v163_v3 = vld [vmem:[%s221_s1 + $0x8] sm:$0xff]   ;;  %v164_v5 = vld [vmem:[%s221_s1 + $0x10] sm:$0xff]   ;;  %vm70_vm2 = vcmask 588800  }
   0x2   :  { %161 = vset.pattern.permute.xlu0 %v170_v2  ;;  %145 = vmatpush3.bf16.msra.mxu0 %v162_v1  ;;  %v26_v4 = vld [vmem:[%s222_s2] sm:$0xff]  ;;  %v27_v6 = vld [vmem:[%s222_s2 + $0x8] sm:$0xff]  ;;  %v165_v7 = vld [vmem:[%s221_s1 + $0x18] sm:$0xff]  }
   0x3   :  { %146 = vmatprep.subr.bf16.mxu0 %v168_v0  ;;  %30 = vperm.xlu0 %161, %v26_v4   ;;  %v166_v8 = vld [vmem:[%s221_s1 + $0x20] ss:$0 sps:$4 sm:$0xff]  }
   0x4   :  { %v76_v9 = vsel %vm74_vm1, %v166_v8, 0  ;;  %v167_v10 = vld [vmem:[%s223_s0] sm:$0xff]  }
   0x6   :  { %147 = vmatpush3.bf16.msra.mxu0 %v163_v3 }
   0x7   :  { %148 = vmatprep.subr.bf16.mxu0 %v168_v0  ;;  %35 = vperm.xlu0 %161, %v27_v6  }
   0xa   :  { %149 = vmatpush3.bf16.msra.mxu0 %v164_v5 }
   0xb   :  { %150 = vmatprep.subr.bf16.mxu0 %v168_v0 }
   0xe   :  { %151 = vmatpush3.bf16.msra.mxu0 %v165_v7 }
   0xf   :  { %152 = vmatprep.subr.bf16.mxu0 %v168_v0 }
  0x12   :  { %153 = vmatpush3.bf16.msra.mxu0 %v76_v9 }
  0x15   :  { %155 = vmatmul.mubr.msk.bf16.vlgmr.msra.gmra.mrb[0].mxu0 %vm70_vm2, %v167_v10 }
  0x82   :  { %v31_v11 = vpop.permute.xlu0 %30 }
  0x86   :  { %v36_v15 = vpop.permute.xlu0 %35 }
  0xe8   :  { %v112_v12 = vpop.f32.mrb[0].mxu0 }
  0xe9   :  { %v113_v13 = vadd.f32 %v112_v12, %v31_v11  ;;  %v156_v14 = vpop.f32.mrb[1].mxu0 }
  0xea   :  { %v115_v16 = vpop.f32.mrb[2].mxu0 }
  0xeb   :  { %vm119_vm3 = vcmp.gt.f32.partialorder %v113_v13, 0.0  ;;  %v121_v17 = vmul.f32 0.1, %v113_v13  ;;  %v116_v18 = vadd.f32 %v115_v16, %v36_v15  ;;  %v157_v19 = vpop.f32.mrb[3].mxu0 }
  0xed   :  { %v123_v20 = vsel %vm119_vm3, %v113_v13, %v121_v17  ;;  %vm120_vm4 = vcmp.gt.f32.partialorder %v116_v18, 0.0  ;;  %v122_v21 = vmul.f32 0.1, %v116_v18 }
  0xee   :  { %125 = vst [vmem:[%s224_s3] sm:$0xff] %v123_v20 }
  0xef   :  { %v124_v22 = vsel %vm120_vm4, %v116_v18, %v122_v21 }
  0xf0   :  { %126 = vst [vmem:[%s224_s3 + $0x8] sm:$0xff] %v124_v22 }

// kernel: _lambda_.8
= control target key start
LH: loop header
LB: loop body
LE: loop exit
PB: predicated region body
PF: predicated region fallthrough
CT: control target
= control target key end

     0   :  { %v123_v0 = vmov 0.0   ;;  %vm124_vm0 = vmmov 0   ;;  %v125_v3 = vmov 0   ;;  %vm45_vm1 = vcmask 130048   ;;  %s175_s1 = inlined_call_operand.vmem [shape: bf16[16,128], index: 1, kind: input, shape index: {}]   ;;  %s176_s0 = inlined_call_operand.vmem [shape: bf16[16,16], index: 0, kind: input, shape index: {}]   ;;  %s177_s2 = inlined_call_operand.vmem [shape: f32[16,1], index: 2, kind: input, shape index: {}]   ;;  %s178_s3 = inlined_call_operand.vmem [shape: f32[16,128], index: 3, kind: input, shape index: {}]   ;;  %s179_s4 = inlined_call_operand.vmem [shape: f32[16,128], index: 4, kind: output, shape index: {}]  }
   0x1   :  { %111 = vmatprep.subr.bf16.mxu0 %v123_v0  ;;  %v121_v1 = vld [vmem:[%s175_s1] sm:$0xff]   ;;  %113 = vmatprep.mubr.msk.bf16.mxu0 %vm124_vm0, %v123_v0  ;;  %v23_v5 = vld [vmem:[%s177_s2 + $0x8] sm:$0xff] }
   0x2   :  { %v122_v2 = vld [vmem:[%s176_s0] sm:$0xff]   ;;  %120 = vset.pattern.permute.xlu0 %v125_v3  ;;  %112 = vmatpush3.bf16.msra.mxu0 %v121_v1  ;;  %v97_v18 = vld [vmem:[%s178_s3 + $0x8] sm:$0xff] }
   0x3   :  { %v22_v4 = vld [vmem:[%s177_s2] sm:$0xff] }
   0x4   :  { %26 = vperm.xlu0 %120, %v22_v4   ;;  %v96_v13 = vld [vmem:[%s178_s3] sm:$0xff] }
   0x5   :  { %114 = vmatmul.mubr.msk.bf16.vlgmr.msra.gmra.mrb[0].mxu0 %vm45_vm1, %v122_v2 }
   0x8   :  { %31 = vperm.xlu0 %120, %v23_v5  }
  0x83   :  { %v27_v6 = vpop.permute.xlu0 %26 }
  0x87   :  { %v32_v10 = vpop.permute.xlu0 %31 }
  0xd8   :  { %v83_v7 = vpop.f32.mrb[0].mxu0 }
  0xd9   :  { %v84_v8 = vadd.f32 %v83_v7, %v27_v6  ;;  %v115_v9 = vpop.f32.mrb[1].mxu0 }
  0xda   :  { %v86_v11 = vpop.f32.mrb[2].mxu0 }
  0xdb   :  { %vm90_vm2 = vcmp.gt.f32.partialorder %v84_v8, 0.0  ;;  %v92_v12 = vmul.f32 0.1, %v84_v8  ;;  %v87_v14 = vadd.f32 %v86_v11, %v32_v10  ;;  %v116_v15 = vpop.f32.mrb[3].mxu0 }
  0xdd   :  { %v94_v16 = vsel %vm90_vm2, %v84_v8, %v92_v12  ;;  %vm91_vm3 = vcmp.gt.f32.partialorder %v87_v14, 0.0  ;;  %v93_v17 = vmul.f32 0.1, %v87_v14 }
  0xde   :  { %v98_v19 = vadd.f32 %v96_v13, %v94_v16 }
  0xdf   :  { %v95_v20 = vsel %vm91_vm3, %v87_v14, %v93_v17 }
  0xe0   :  { %100 = vst [vmem:[%s179_s4] sm:$0xff] %v98_v19  ;;  %v99_v21 = vadd.f32 %v97_v18, %v95_v20 }
  0xe2   :  { %101 = vst [vmem:[%s179_s4 + $0x8] sm:$0xff] %v99_v21 }

// kernel: _lambda_.10
= control target key start
LH: loop header
LB: loop body
LE: loop exit
PB: predicated region body
PF: predicated region fallthrough
CT: control target
= control target key end

     0   :  { %v97_v0 = vmov 0.0   ;;  %vm98_vm0 = vmmov 0   ;;  %v99_v2 = vmov 0   ;;  %vm30_vm1 = vcmask 130048   ;;  %s132_s1 = inlined_call_operand.vmem [shape: bf16[16,128], index: 1, kind: input, shape index: {}]   ;;  %s133_s0 = inlined_call_operand.vmem [shape: bf16[8,16], index: 0, kind: input, shape index: {}]   ;;  %s134_s2 = inlined_call_operand.vmem [shape: f32[8,1], index: 2, kind: input, shape index: {}]   ;;  %s135_s3 = inlined_call_operand.vmem [shape: f32[8,128], index: 3, kind: output, shape index: {}]  }
   0x1   :  { %86 = vmatprep.subr.bf16.mxu0 %v97_v0  ;;  %v96_v1 = vld [vmem:[%s132_s1] sm:$0xff]   ;;  %88 = vmatprep.mubr.msk.bf16.mxu0 %vm98_vm0, %v97_v0 }
   0x2   :  { %95 = vset.pattern.permute.xlu0 %v99_v2  ;;  %v18_v3 = vld [vmem:[%s134_s2] sm:$0xff]  ;;  %87 = vmatpush3.bf16.msra.mxu0 %v96_v1 }
   0x3   :  { %v15_v4 = vld [vmem:[%s133_s0] sm:$0xf]  ;;  %21 = vperm.xlu0 %95, %v18_v3  }
   0x5   :  { %89 = vmatmul.mubr.msk.bf16.vlgmr.msra.gmra.mrb[0].mxu0 %vm30_vm1, %v15_v4 }
  0x82   :  { %v22_v5 = vpop.permute.xlu0 %21 }
  0xd8   :  { %v68_v6 = vpop.f32.mrb[0].mxu0 }
  0xd9   :  { %v69_v7 = vadd.f32 %v68_v6, %v22_v5  ;;  %v90_v8 = vpop.f32.mrb[1].mxu0 }
  0xda   :  { %v71_v9 = vpop.f32.mrb[2].mxu0 }
  0xdb   :  { %vm74_vm2 = vcmp.gt.f32.partialorder %v69_v7, 0.0  ;;  %v75_v10 = vmul.f32 0.1, %v69_v7  ;;  %v91_v11 = vpop.f32.mrb[3].mxu0 }
  0xdd   :  { %v76_v12 = vsel %vm74_vm2, %v69_v7, %v75_v10 }
  0xde   :  { %77 = vst [vmem:[%s135_s3] sm:$0xff] %v76_v12 }

// kernel: _lambda_.11
= control target key start
LH: loop header
LB: loop body
LE: loop exit
PB: predicated region body
PF: predicated region fallthrough
CT: control target
= control target key end

     0   :  { %v878_v1 = vmov 0   ;;  %vm270_vm0 = vcmask 130048   ;;  %v382_v48 = vlaneseq  ;;  %s1356_s1 = inlined_call_operand.vmem [shape: bf16[144,512], index: 1, kind: input, shape index: {}]   ;;  %s1357_s0 = inlined_call_operand.vmem [shape: bf16[18,144], index: 0, kind: input, shape index: {}]   ;;  %s1358_s2 = inlined_call_operand.vmem [shape: f32[18,1], index: 2, kind: input, shape index: {}]   ;;  %s1359_s3 = inlined_call_operand.vmem [shape: f32[18,1], index: 3, kind: input, shape index: {}]   ;;  %s1360_s4 = inlined_call_operand.vmem [shape: f32[18,512], index: 4, kind: output, shape index: {}]  }
   0x1   :  { %v747_v0 = vld [vmem:[%s1356_s1 + $0x4] ss:$16 sps:$4 sm:$0xff]   ;;  %745 = vset.pattern.permute.xlu0 %v878_v1  ;;  %746 = vset.pattern.permute.xlu1 %v878_v1  ;;  %v749_v2 = vld [vmem:[%s1356_s1 + $0xc] ss:$16 sps:$4 sm:$0xff]   ;;  %v751_v3 = vld [vmem:[%s1356_s1] ss:$16 sps:$4 sm:$0xff]  }
   0x2   :  { %277 = vmatprep.subr.bf16.mxu0 %v747_v0  ;;  %v752_v4 = vld [vmem:[%s1356_s1 + $0x8] ss:$16 sps:$4 sm:$0xff]   ;;  %328 = vmatprep.subr.bf16.mxu1 %v749_v2  ;;  %v753_v5 = vld [vmem:[%s1356_s1 + $0x24] ss:$16 sps:$4 sm:$0xff]   ;;  %v755_v6 = vld [vmem:[%s1356_s1 + $0x2c] ss:$16 sps:$4 sm:$0xff]  }
   0x3   :  { %278 = vmatpush1.bf16.msra.mxu0 %v751_v3  ;;  %329 = vmatpush1.bf16.msra.mxu1 %v752_v4  ;;  %v757_v7 = vld [vmem:[%s1356_s1 + $0x20] ss:$16 sps:$4 sm:$0xff]   ;;  %v758_v8 = vld [vmem:[%s1356_s1 + $0x28] ss:$16 sps:$4 sm:$0xff]   ;;  %v759_v9 = vld [vmem:[%s1356_s1 + $0x44] ss:$16 sps:$4 sm:$0xff]  }
   0x4   :  { %279 = vmatprep.subr.bf16.mxu0 %v753_v5  ;;  %330 = vmatprep.subr.bf16.mxu1 %v755_v6  ;;  %v761_v10 = vld [vmem:[%s1356_s1 + $0x4c] ss:$16 sps:$4 sm:$0xff]   ;;  %v763_v11 = vld [vmem:[%s1356_s1 + $0x40] ss:$16 sps:$4 sm:$0xff]   ;;  %v764_v12 = vld [vmem:[%s1356_s1 + $0x48] ss:$16 sps:$4 sm:$0xff]  }
   0x5   :  { %v765_v13 = vld [vmem:[%s1356_s1 + $0x64] ss:$16 sps:$4 sm:$0xff]   ;;  %v767_v14 = vld [vmem:[%s1356_s1 + $0x6c] ss:$16 sps:$4 sm:$0xff]   ;;  %v769_v15 = vld [vmem:[%s1356_s1 + $0x60] ss:$16 sps:$4 sm:$0xff]  }
   0x6   :  { %v770_v16 = vld [vmem:[%s1356_s1 + $0x68] ss:$16 sps:$4 sm:$0xff]   ;;  %v771_v17 = vld [vmem:[%s1356_s1 + $0x84] ss:$16 sps:$4 sm:$0xff]   ;;  %v773_v18 = vld [vmem:[%s1356_s1 + $0x8c] ss:$16 sps:$4 sm:$0xff]  }
   0x7   :  { %280 = vmatpush1.bf16.msra.mxu0 %v757_v7  ;;  %331 = vmatpush1.bf16.msra.mxu1 %v758_v8  ;;  %v775_v19 = vld [vmem:[%s1356_s1 + $0x80] ss:$16 sps:$4 sm:$0xff]   ;;  %v776_v20 = vld [vmem:[%s1356_s1 + $0x88] ss:$16 sps:$4 sm:$0xff]   ;;  %v777_v21 = vld [vmem:[%s1356_s1 + $0xa4] ss:$16 sps:$4 sm:$0xff]  }
   0x8   :  { %281 = vmatprep.subr.bf16.mxu0 %v759_v9  ;;  %332 = vmatprep.subr.bf16.mxu1 %v761_v10  ;;  %v779_v22 = vld [vmem:[%s1356_s1 + $0xac] ss:$16 sps:$4 sm:$0xff]   ;;  %v781_v23 = vld [vmem:[%s1356_s1 + $0xa0] ss:$16 sps:$4 sm:$0xff]   ;;  %v782_v24 = vld [vmem:[%s1356_s1 + $0xa8] ss:$16 sps:$4 sm:$0xff]  }
   0x9   :  { %v783_v25 = vld [vmem:[%s1356_s1 + $0xc4] ss:$16 sps:$4 sm:$0xff]   ;;  %v785_v26 = vld [vmem:[%s1356_s1 + $0xcc] ss:$16 sps:$4 sm:$0xff]   ;;  %v787_v27 = vld [vmem:[%s1356_s1 + $0xc0] ss:$16 sps:$4 sm:$0xff]  }
   0xa   :  { %v788_v28 = vld [vmem:[%s1356_s1 + $0xc8] ss:$16 sps:$4 sm:$0xff]   ;;  %v789_v29 = vld [vmem:[%s1356_s1 + $0xe4] ss:$16 sps:$4 sm:$0xff]   ;;  %v791_v30 = vld [vmem:[%s1356_s1 + $0xec] ss:$16 sps:$4 sm:$0xff]  }
   0xb   :  { %282 = vmatpush1.bf16.msra.mxu0 %v763_v11  ;;  %333 = vmatpush1.bf16.msra.mxu1 %v764_v12  ;;  %v803_v31 = vld [vmem:[%s1357_s0 + $0x4] ss:$8 sps:$4 sm:$0xff]   ;;  %v59_v33 = vld [vmem:[%s1358_s2 + $0x10] sm:$0x3]  ;;  %v794_v36 = vld [vmem:[%s1356_s1 + $0xe8] ss:$16 sps:$4 sm:$0xff]  }
   0xc   :  { %283 = vmatprep.subr.bf16.mxu0 %v765_v13  ;;  %334 = vmatprep.subr.bf16.mxu1 %v767_v14  ;;  %v57_v32 = vld [vmem:[%s1358_s2] sm:$0xff]  ;;  %v58_v34 = vld [vmem:[%s1358_s2 + $0x8] sm:$0xff]  ;;  %v20_v43 = vld [vmem:[%s1357_s0 + $0x10] sm:$0x11]  ;;  %v383_v49 = vshrl.u32 %v382_v48, 7  ;;  %v1043_v54 = vand.u32 127, %v382_v48 }
   0xd   :  { %62 = vperm.xlu0 %745, %v57_v32   ;;  %728 = vmatprep.mubr.msk.bf16.mxu0 %vm270_vm0, %v803_v31  ;;  %v793_v35 = vld [vmem:[%s1356_s1 + $0xe0] ss:$16 sps:$4 sm:$0xff]   ;;  %v795_v37 = vld [vmem:[%s1356_s1 + $0x104] ss:$16 sps:$4 sm:$0xff]   ;;  %v797_v38 = vld [vmem:[%s1356_s1 + $0x10c] ss:$16 sps:$4 sm:$0xff]   ;;  %v691_v46 = vcombine.high %v20_v43, %v20_v43  ;;  %v690_v47 = vcombine.low %v20_v43, %v20_v43 }
   0xe   :  { %730 = vmatprep.mubr.msk.bf16.mxu1 %vm270_vm0, %v803_v31  ;;  %72 = vperm.xlu1 %746, %v59_v33   ;;  %v379_v39 = vld [vmem:[%s1359_s3] sm:$0xff]  ;;  %v380_v40 = vld [vmem:[%s1359_s3 + $0x8] sm:$0xff]  ;;  %v381_v45 = vld [vmem:[%s1359_s3 + $0x10] sm:$0x3]  ;;  %v386_v50 = vcvt.s32.f32 %v383_v49  ;;  %v384_v51 = vadd.s32 8, %v383_v49  ;;  %v412_v55 = vcvt.s32.f32 %v1043_v54  ;;  %v1049_v59 = vadd.s32 256, %v1043_v54 }
   0xf   :  { %284 = vmatpush1.bf16.msra.mxu0 %v769_v15  ;;  %335 = vmatpush1.bf16.msra.mxu1 %v770_v16  ;;  %v799_v41 = vld [vmem:[%s1356_s1 + $0x100] ss:$16 sps:$4 sm:$0xff]   ;;  %v800_v42 = vld [vmem:[%s1356_s1 + $0x108] ss:$16 sps:$4 sm:$0xff]   ;;  %v1052_v62 = vadd.s32 128, %v1043_v54  ;;  %v1055_v63 = vadd.s32 384, %v1043_v54 }
  0x10   :  { %285 = vmatprep.subr.bf16.mxu0 %v771_v17  ;;  %336 = vmatprep.subr.bf16.mxu1 %v773_v18  ;;  %v801_v44 = vld [vmem:[%s1357_s0] ss:$8 sps:$4 sm:$0xff]   ;;  %v389_v52 = vadd.f32 0.5, %v386_v50  ;;  %v387_v53 = vcvt.s32.f32 %v384_v51  ;;  %v421_v58 = vadd.f32 0.5, %v412_v55  ;;  %v1057_v0 = vadd.s32 16, %v383_v49 }
  0x11   :  { %67 = vperm.xlu0 %745, %v58_v34   ;;  %v414_v2 = vcvt.s32.f32 %v1049_v59  ;;  %v413_v5 = vcvt.s32.f32 %v1052_v62  ;;  %v415_v6 = vcvt.s32.f32 %v1055_v63 }
  0x12   :  { %623 = vperm.xlu1 %746, %v379_v39   ;;  %v393_v56 = vmul.f32 0.16666667, %v389_v52  ;;  %v390_v57 = vadd.f32 0.5, %v387_v53  ;;  %v426_v1 = vmul.f32 0.0625, %v421_v58  ;;  %v388_v7 = vcvt.s32.f32 %v1057_v0 }
  0x13   :  { %286 = vmatpush1.bf16.msra.mxu0 %v775_v19  ;;  %337 = vmatpush1.bf16.msra.mxu1 %v776_v20  ;;  %v423_v9 = vadd.f32 0.5, %v414_v2  ;;  %v422_v13 = vadd.f32 0.5, %v413_v5  ;;  %v424_v14 = vadd.f32 0.5, %v415_v6 }
  0x14   :  { %287 = vmatprep.subr.bf16.mxu0 %v777_v21  ;;  %338 = vmatprep.subr.bf16.mxu1 %v779_v22  ;;  %v396_v60 = vfloor.f32 %v393_v56  ;;  %v394_v61 = vmul.f32 0.16666667, %v390_v57  ;;  %v1063_v8 = vfloor.f32 %v426_v1  ;;  %v391_v15 = vadd.f32 0.5, %v388_v7 }
  0x15   :  { %628 = vperm.xlu0 %745, %v380_v40   ;;  %v428_v17 = vmul.f32 0.0625, %v423_v9  ;;  %v427_v19 = vmul.f32 0.0625, %v422_v13  ;;  %v429_v20 = vmul.f32 0.0625, %v424_v14 }
  0x16   :  { %633 = vperm.xlu1 %746, %v381_v45   ;;  %v399_v3 = vmul.f32 6.0, %v396_v60  ;;  %v397_v4 = vfloor.f32 %v394_v61  ;;  %v442_v16 = vadd.f32 0.5, %v1063_v8  ;;  %v395_v21 = vmul.f32 0.16666667, %v391_v15 }
  0x17   :  { %288 = vmatpush1.bf16.msra.mxu0 %v781_v23  ;;  %339 = vmatpush1.bf16.msra.mxu1 %v782_v24  ;;  %v1089_v33 = vfloor.f32 %v427_v19  ;;  %v1091_v34 = vfloor.f32 %v429_v20 }
  0x18   :  { %289 = vmatprep.subr.bf16.mxu0 %v783_v25  ;;  %340 = vmatprep.subr.bf16.mxu1 %v785_v26  ;;  %v1067_v11 = vsub.f32 %v386_v50, %v399_v3  ;;  %v400_v12 = vmul.f32 6.0, %v397_v4  ;;  %v446_v24 = vmul.f32 0.0625, %v442_v16 }
  0x19   :  { %v443_v51 = vadd.f32 0.5, %v1089_v33  ;;  %v445_v52 = vadd.f32 0.5, %v1091_v34 }
  0x1a   :  { %vm552_vm1 = vcmp.gt.f32.partialorder %v1067_v11, 1.5  ;;  %vm555_vm2 = vcmp.lt.f32.partialorder %v1067_v11, 3.5  ;;  %v1078_v18 = vsub.f32 %v387_v53, %v400_v12  ;;  %v450_v43 = vfloor.f32 %v446_v24 }
  0x1b   :  { %290 = vmatpush1.bf16.msra.mxu0 %v787_v27  ;;  %341 = vmatpush1.bf16.msra.mxu1 %v788_v28  ;;  %vm1082_vm3 = vmand %vm552_vm1, %vm555_vm2  ;;  %v1086_v27 = vfloor.f32 %v428_v17  ;;  %v447_v15 = vmul.f32 0.0625, %v443_v51  ;;  %v449_v20 = vmul.f32 0.0625, %v445_v52  ;;  %vm462_vm7 = vcmp.lt.f32.partialorder %v1067_v11, 0.5 }
  0x1c   :  { %291 = vmatprep.subr.bf16.mxu0 %v789_v29  ;;  %342 = vmatprep.subr.bf16.mxu1 %v791_v30  ;;  %vm553_vm4 = vcmp.gt.f32.partialorder %v1078_v18, 1.5  ;;  %vm556_vm5 = vcmp.lt.f32.partialorder %v1078_v18, 3.5  ;;  %v454_v60 = vmul.f32 16.0, %v450_v43  ;;  %vm463_vm11 = vcmp.lt.f32.partialorder %v1078_v18, 0.5 }
  0x1d   :  { %vm1114_vm6 = vmand %vm553_vm4, %vm556_vm5  ;;  %v451_v54 = vfloor.f32 %v447_v15  ;;  %vm549_vm12 = vcmp.lt.f32.partialorder %v1067_v11, 1.5  ;;  %vm550_vm13 = vcmp.lt.f32.partialorder %v1078_v18, 1.5 }
  0x1f   :  { %292 = vmatpush1.bf16.msra.mxu0 %v793_v35  ;;  %343 = vmatpush1.bf16.msra.mxu1 %v794_v36 }
  0x20   :  { %293 = vmatprep.subr.bf16.mxu0 %v795_v37  ;;  %344 = vmatprep.subr.bf16.mxu1 %v797_v38  ;;  %v398_v37 = vfloor.f32 %v395_v21 }
  0x22   :  { %v401_v53 = vmul.f32 6.0, %v398_v37 }
  0x23   :  { %294 = vmatpush1.bf16.msra.mxu0 %v799_v41  ;;  %345 = vmatpush1.bf16.msra.mxu1 %v800_v42  ;;  %v434_v42 = vmul.f32 16.0, %v1063_v8 }
  0x24   :  { %v1125_v17 = vsub.f32 %v388_v7, %v401_v53 }
  0x26   :  { %310 = vmatmul.mubr.bf16.vlgmr.msra.gmra.mrb[0].mxu0 %v801_v44  ;;  %361 = vmatmul.mubr.bf16.vlgmr.msra.gmra.mrb[0].mxu1 %v801_v44  ;;  %v444_v44 = vadd.f32 0.5, %v1086_v27  ;;  %vm554_vm8 = vcmp.gt.f32.partialorder %v1125_v17, 1.5  ;;  %vm557_vm9 = vcmp.lt.f32.partialorder %v1125_v17, 3.5  ;;  %vm464_vm14 = vcmp.lt.f32.partialorder %v1125_v17, 0.5 }
  0x27   :  { %729 = vmatprep.mubr.msk.bf16.mxu0 %vm270_vm0, %v691_v46  ;;  %731 = vmatprep.mubr.msk.bf16.mxu1 %vm270_vm0, %v691_v46  ;;  %vm1201_vm10 = vmand %vm554_vm8, %vm557_vm9  ;;  %vm551_vm15 = vcmp.lt.f32.partialorder %v1125_v17, 1.5 }
  0x28   :  { %v448_v61 = vmul.f32 0.0625, %v444_v44 }
  0x2a   :  { %v452_v7 = vfloor.f32 %v448_v61 }
  0x2e   :  { %320 = vmatmul.mubr.bf16.gmra.mrb[4].mxu0 %v690_v47  ;;  %371 = vmatmul.mubr.bf16.gmra.mrb[4].mxu1 %v690_v47 }
  0x8c   :  { %v63_v10 = vpop.permute.xlu0 %62 }
  0x90   :  { %v1080_v22 = vpop.permute.xlu0 %67 }
  0xf9   :  { %v311_v23 = vpop.f32.mrb[0].mxu0  ;;  %v362_v26 = vpop.f32.mrb[0].mxu1 }
  0xfa   :  { %v312_v28 = vadd.f32 %v311_v23, %v63_v10  ;;  %v363_v29 = vadd.f32 %v362_v26, %v63_v10  ;;  %v313_v30 = vpop.f32.mrb[1].mxu0  ;;  %v364_v31 = vpop.f32.mrb[1].mxu1  ;;  %v1131_v26 = vsub.f32 %v412_v55, %v434_v42 }
  0xfb   :  { %v314_v32 = vadd.f32 %v313_v30, %v63_v10  ;;  %v315_v35 = vpop.f32.mrb[2].mxu0  ;;  %v366_v36 = vpop.f32.mrb[2].mxu1  ;;  %v365_v41 = vadd.f32 %v364_v31, %v63_v10 }
  0xfc   :  { %v732_v38 = vmul.f32 -1.442695, %v312_v28  ;;  %v585_v39 = vsel %vm1082_vm3, %v312_v28, 0.0  ;;  %v734_v40 = vmul.f32 -1.442695, %v363_v29  ;;  %v587_v45 = vsel %vm1082_vm3, %v363_v29, 0.0 }
  0xfd   :  { %v733_v46 = vmul.f32 -1.442695, %v314_v32  ;;  %v316_v47 = vadd.f32 %v315_v35, %v1080_v22  ;;  %v317_v48 = vpop.f32.mrb[3].mxu0  ;;  %v368_v49 = vpop.f32.mrb[3].mxu1  ;;  %v597_v50 = vmul.f32 1.442695, %v585_v39  ;;  %v367_v58 = vadd.f32 %v366_v36, %v1080_v22 }
  0xfe   :  { %806 = vpow2.f32 %v732_v38  ;;  %v586_v56 = vsel %vm1082_vm3, %v314_v32, 0.0  ;;  %v735_v57 = vmul.f32 -1.442695, %v365_v41  ;;  %v601_v1 = vmul.f32 1.442695, %v587_v45 }
  0xff   :  { %808 = vpow2.f32 %v734_v40  ;;  %v588_v9 = vsel %vm1082_vm3, %v365_v41, 0.0  ;;  %v736_v10 = vmul.f32 -1.442695, %v316_v47  ;;  %v1119_v13 = vadd.f32 %v317_v48, %v1080_v22 }
 0x100   :  { %810 = vpow2.f32 %v733_v46  ;;  %v599_v16 = vmul.f32 1.442695, %v586_v56  ;;  %v738_v21 = vmul.f32 -1.442695, %v367_v58  ;;  %v603_v28 = vmul.f32 1.442695, %v588_v9 }
 0x101   :  { %v321_v3 = vpop.f32.mrb[4].mxu0  ;;  %v1106_v4 = vpop.f32.mrb[4].mxu1  ;;  %812 = vpow2.f32 %v597_v50  ;;  %v589_v29 = vsel %vm1114_vm6, %v316_v47, 0.0  ;;  %v737_v31 = vmul.f32 -1.442695, %v1119_v13  ;;  %v1137_v32 = vadd.f32 %v368_v49, %v1080_v22 }
 0x102   :  { %v1121_v14 = vpop.f32.mrb[5].mxu0  ;;  %v1127_v19 = vpop.f32.mrb[5].mxu1  ;;  %814 = vpow2.f32 %v735_v57  ;;  %v1140_v35 = vsub.f32 %v1063_v8, %v454_v60  ;;  %v453_v36 = vfloor.f32 %v449_v20  ;;  %v605_v37 = vmul.f32 1.442695, %v589_v29 }
 0x103   :  { %v325_v23 = vpop.f32.mrb[6].mxu0  ;;  %v376_v24 = vpop.f32.mrb[6].mxu1  ;;  %816 = vpow2.f32 %v601_v1  ;;  %v436_v39 = vmul.f32 16.0, %v1086_v27  ;;  %v591_v8 = vsel %vm1114_vm6, %v367_v58, 0.0  ;;  %v456_v41 = vmul.f32 16.0, %v452_v7 }
 0x104   :  { %v326_v30 = vpop.f32.mrb[7].mxu0  ;;  %v377_v0 = vpop.f32.mrb[7].mxu1  ;;  %818 = vpow2.f32 %v736_v10  ;;  %v739_v42 = vmul.f32 -1.442695, %v1137_v32  ;;  %v435_v45 = vmul.f32 16.0, %v1089_v33  ;;  %v455_v46 = vmul.f32 16.0, %v451_v54 }
 0x105   :  { %820 = vpow2.f32 %v599_v16  ;;  %v1146_v22 = vpop.permute.xlu1 %72  ;;  %v437_v48 = vmul.f32 16.0, %v1091_v34  ;;  %v457_v49 = vmul.f32 16.0, %v453_v36  ;;  %v609_v50 = vmul.f32 1.442695, %v591_v8 }
 0x106   :  { %822 = vpow2.f32 %v738_v21  ;;  %v1152_v43 = vadd.f32 %v321_v3, %v1146_v22  ;;  %v1158_v52 = vsub.f32 %v414_v2, %v436_v39  ;;  %v590_v56 = vsel %vm1114_vm6, %v1119_v13, 0.0 }
 0x107   :  { %824 = vpow2.f32 %v603_v28  ;;  %v1164_v58 = vsub.f32 %v1086_v27, %v456_v41  ;;  %v1169_v61 = vadd.f32 %v1106_v4, %v1146_v22  ;;  %v1173_v2 = vsub.f32 %v413_v5, %v435_v45 }
 0x108   :  { %v807_v55 = vpop.eup %806  ;;  %826 = vpow2.f32 %v737_v31  ;;  %v740_v60 = vmul.f32 -1.442695, %v1152_v43  ;;  %v1176_v1 = vsub.f32 %v1089_v33, %v455_v46  ;;  %v1180_v27 = vsub.f32 %v415_v6, %v437_v48 }
 0x109   :  { %v513_v38 = vadd.f32 1.0, %v807_v55  ;;  %v809_v40 = vpop.eup %808  ;;  %v1183_v10 = vsub.f32 %v1091_v34, %v457_v49  ;;  %v607_v4 = vmul.f32 1.442695, %v590_v56  ;;  %v1187_v5 = vadd.f32 %v1121_v14, %v1146_v22  ;;  %v624_v54 = vpop.permute.xlu1 %623 }
 0x10a   :  { %v515_v44 = vadd.f32 1.0, %v809_v40  ;;  %v811_v47 = vpop.eup %810  ;;  %v465_v63 = vsel %vm462_vm7, %v1131_v26, %v1140_v35  ;;  %v467_v6 = vsel %vm462_vm7, %v1158_v52, %v1164_v58  ;;  %v742_v14 = vmul.f32 -1.442695, %v1169_v61 }
 0x10b   :  { %828 = vrcp.f32 %v513_v38  ;;  %v813_v51 = vpop.eup %812  ;;  %v514_v53 = vadd.f32 1.0, %v811_v47  ;;  %v592_v20 = vsel %vm1114_vm6, %v1137_v32, 0.0  ;;  %v466_v23 = vsel %vm462_vm7, %v1173_v2, %v1176_v1 }
 0x10c   :  { %830 = vpow2.f32 %v605_v37  ;;  %v815_v57 = vpop.eup %814  ;;  %v468_v24 = vsel %vm462_vm7, %v1180_v27, %v1183_v10  ;;  %v593_v30 = vsel %vm1201_vm10, %v1152_v43, 0.0  ;;  %v741_v0 = vmul.f32 -1.442695, %v1187_v5 }
 0x10d   :  { %832 = vrcp.f32 %v515_v44  ;;  %v817_v59 = vpop.eup %816  ;;  %v516_v3 = vadd.f32 1.0, %v815_v57  ;;  %v611_v32 = vmul.f32 1.442695, %v592_v20  ;;  %v469_v55 = vsel %vm463_vm11, %v1131_v26, %v1140_v35 }
 0x10e   :  { %834 = vpow2.f32 %v739_v42  ;;  %v819_v9 = vpop.eup %818  ;;  %v636_v37 = vmul.f32 %v813_v51, %v624_v54  ;;  %v471_v38 = vsel %vm463_vm11, %v1158_v52, %v1164_v58  ;;  %v1234_v39 = vadd.f32 %v1127_v19, %v1146_v22 }
 0x10f   :  { %836 = vrcp.f32 %v514_v53  ;;  %v821_v13 = vpop.eup %820  ;;  %v517_v62 = vadd.f32 1.0, %v819_v9  ;;  %v613_v42 = vmul.f32 1.442695, %v593_v30  ;;  %v595_v43 = vsel %vm1201_vm10, %v1169_v61, 0.0 }
 0x110   :  { %838 = vpow2.f32 %v609_v50  ;;  %v823_v33 = vpop.eup %822  ;;  %v638_v46 = vmul.f32 %v817_v59, %v624_v54  ;;  %v637_v51 = vmul.f32 %v821_v13, %v624_v54  ;;  %v617_v56 = vmul.f32 1.442695, %v595_v43 }
 0x111   :  { %840 = vrcp.f32 %v516_v3  ;;  %v825_v15 = vpop.eup %824  ;;  %v519_v16 = vadd.f32 1.0, %v823_v33  ;;  %v594_v3 = vsel %vm1201_vm10, %v1187_v5, 0.0  ;;  %v743_v33 = vmul.f32 -1.442695, %v1234_v39 }
 0x112   :  { %842 = vpow2.f32 %v740_v60  ;;  %v827_v21 = vpop.eup %826 }
 0x113   :  { %844 = vrcp.f32 %v517_v62  ;;  %v518_v29 = vadd.f32 1.0, %v827_v21  ;;  %v470_v21 = vsel %vm463_vm11, %v1173_v2, %v1176_v1 }
 0x114   :  { %846 = vpow2.f32 %v607_v4  ;;  %v639_v4 = vmul.f32 %v825_v15, %v624_v54 }
 0x115   :  { %v829_v28 = vpop.eup %828  ;;  %848 = vrcp.f32 %v519_v16  ;;  %v629_v16 = vpop.permute.xlu0 %628 }
 0x116   :  { %v831_v7 = vpop.eup %830  ;;  %v561_v31 = vadd.f32 %v829_v28, %v465_v63  ;;  %850 = vpow2.f32 %v742_v14  ;;  %v648_v47 = vsel %vm1082_vm3, %v636_v37, %v829_v28  ;;  %v472_v37 = vsel %vm463_vm11, %v1180_v27, %v1183_v10 }
 0x117   :  { %v833_v36 = vpop.eup %832  ;;  %852 = vrcp.f32 %v518_v29 }
 0x118   :  { %v835_v8 = vpop.eup %834  ;;  %v563_v40 = vadd.f32 %v833_v36, %v467_v6  ;;  %v573_v41 = vmul.f32 0.0625, %v561_v31  ;;  %854 = vpow2.f32 %v741_v0  ;;  %v650_v53 = vsel %vm1082_vm3, %v638_v46, %v833_v36 }
 0x119   :  { %v837_v44 = vpop.eup %836  ;;  %v520_v45 = vadd.f32 1.0, %v835_v8  ;;  %856 = vpow2.f32 %v611_v32  ;;  %v615_v0 = vmul.f32 1.442695, %v594_v3 }
 0x11a   :  { %v839_v48 = vpop.eup %838  ;;  %v562_v49 = vadd.f32 %v837_v44, %v466_v23  ;;  %v575_v19 = vmul.f32 0.0625, %v563_v40  ;;  %v660_v22 = vsel %vm549_vm12, %v573_v41, %v648_v47  ;;  %v649_v13 = vsel %vm1082_vm3, %v637_v51, %v837_v44 }
 0x11b   :  { %v841_v50 = vpop.eup %840  ;;  %858 = vrcp.f32 %v520_v45  ;;  %672 = vst [vmem:[%s1360_s4] sm:$0xff] %v660_v22  ;;  %v640_v23 = vmul.f32 %v831_v7, %v629_v16  ;;  %v642_v31 = vmul.f32 %v839_v48, %v629_v16  ;;  %v596_v48 = vsel %vm1201_vm10, %v1234_v39, 0.0 }
 0x11c   :  { %v843_v57 = vpop.eup %842  ;;  %v564_v60 = vadd.f32 %v841_v50, %v468_v24  ;;  %v574_v61 = vmul.f32 0.0625, %v562_v49  ;;  %v662_v59 = vsel %vm549_vm12, %v575_v19, %v650_v53  ;;  %860 = vpow2.f32 %v613_v42 }
 0x11d   :  { %v845_v9 = vpop.eup %844  ;;  %674 = vst [vmem:[%s1360_s4 + $0x10] sm:$0xff] %v662_v59  ;;  %v521_v62 = vadd.f32 1.0, %v843_v57  ;;  %v651_v15 = vsel %vm1082_vm3, %v639_v4, %v841_v50  ;;  %v473_v19 = vsel %vm464_vm14, %v1131_v26, %v1140_v35  ;;  %v634_v57 = vpop.permute.xlu1 %633  ;;  %v475_v26 = vsel %vm464_vm14, %v1158_v52, %v1164_v58 }
 0x11e   :  { %v847_v63 = vpop.eup %846  ;;  %v576_v6 = vmul.f32 0.0625, %v564_v60  ;;  %v661_v14 = vsel %vm549_vm12, %v574_v61, %v649_v13  ;;  %v565_v20 = vadd.f32 %v845_v9, %v469_v55  ;;  %v652_v32 = vsel %vm1114_vm6, %v640_v23, %v845_v9 }
 0x11f   :  { %v849_v5 = vpop.eup %848  ;;  %673 = vst [vmem:[%s1360_s4 + $0x8] sm:$0xff] %v661_v14  ;;  %862 = vrcp.f32 %v521_v62  ;;  %v474_v52 = vsel %vm464_vm14, %v1173_v2, %v1176_v1 }
 0x120   :  { %v851_v24 = vpop.eup %850  ;;  %v663_v28 = vsel %vm549_vm12, %v576_v6, %v651_v15  ;;  %v567_v29 = vadd.f32 %v849_v5, %v471_v38  ;;  %v577_v30 = vmul.f32 0.0625, %v565_v20  ;;  %864 = vpow2.f32 %v743_v33 }
 0x121   :  { %v853_v25 = vpop.eup %852  ;;  %675 = vst [vmem:[%s1360_s4 + $0x18] sm:$0xff] %v663_v28  ;;  %v523_v54 = vadd.f32 1.0, %v851_v24  ;;  %866 = vpow2.f32 %v617_v56  ;;  %v641_v38 = vmul.f32 %v847_v63, %v629_v16  ;;  %v654_v8 = vsel %vm1114_vm6, %v642_v31, %v849_v5 }
 0x122   :  { %v566_v7 = vadd.f32 %v853_v25, %v470_v21  ;;  %v579_v55 = vmul.f32 0.0625, %v567_v29  ;;  %v664_v11 = vsel %vm550_vm13, %v577_v30, %v652_v32  ;;  %v855_v36 = vpop.eup %854  ;;  %v619_v56 = vmul.f32 1.442695, %v596_v48 }
 0x123   :  { %676 = vst [vmem:[%s1360_s4 + $0x20] sm:$0xff] %v664_v11  ;;  %868 = vrcp.f32 %v523_v54  ;;  %v857_v40 = vpop.eup %856  ;;  %v522_v43 = vadd.f32 1.0, %v855_v36  ;;  %v653_v45 = vsel %vm1114_vm6, %v641_v38, %v853_v25  ;;  %v476_v15 = vsel %vm464_vm14, %v1180_v27, %v1183_v10 }
 0x124   :  { %v578_v41 = vmul.f32 0.0625, %v566_v7  ;;  %v666_v42 = vsel %vm550_vm13, %v579_v55, %v654_v8  ;;  %870 = vpow2.f32 %v615_v0  ;;  %v643_v49 = vmul.f32 %v857_v40, %v629_v16 }
 0x125   :  { %v859_v44 = vpop.eup %858  ;;  %678 = vst [vmem:[%s1360_s4 + $0x30] sm:$0xff] %v666_v42  ;;  %872 = vrcp.f32 %v522_v43 }
 0x126   :  { %v568_v46 = vadd.f32 %v859_v44, %v472_v37  ;;  %v665_v47 = vsel %vm550_vm13, %v578_v41, %v653_v45  ;;  %v861_v22 = vpop.eup %860  ;;  %v655_v53 = vsel %vm1114_vm6, %v643_v49, %v859_v44  ;;  %874 = vpow2.f32 %v619_v56 }
 0x127   :  { %677 = vst [vmem:[%s1360_s4 + $0x28] sm:$0xff] %v665_v47  ;;  %v644_v12 = vmul.f32 %v861_v22, %v634_v57 }
 0x128   :  { %v580_v50 = vmul.f32 0.0625, %v568_v46 }
 0x129   :  { %v863_v51 = vpop.eup %862 }
 0x12a   :  { %v667_v39 = vsel %vm550_vm13, %v580_v50, %v655_v53  ;;  %v569_v60 = vadd.f32 %v863_v51, %v473_v19  ;;  %v865_v61 = vpop.eup %864  ;;  %v656_v9 = vsel %vm1201_vm10, %v644_v12, %v863_v51 }
 0x12b   :  { %679 = vst [vmem:[%s1360_s4 + $0x38] sm:$0xff] %v667_v39  ;;  %v867_v35 = vpop.eup %866  ;;  %v524_v3 = vadd.f32 1.0, %v865_v61 }
 0x12c   :  { %v581_v59 = vmul.f32 0.0625, %v569_v60  ;;  %v646_v62 = vmul.f32 %v867_v35, %v634_v57 }
 0x12d   :  { %v869_v18 = vpop.eup %868  ;;  %876 = vrcp.f32 %v524_v3 }
 0x12e   :  { %v571_v4 = vadd.f32 %v869_v18, %v475_v26  ;;  %v668_v13 = vsel %vm551_vm15, %v581_v59, %v656_v9  ;;  %v871_v58 = vpop.eup %870  ;;  %v658_v6 = vsel %vm1201_vm10, %v646_v62, %v869_v18 }
 0x12f   :  { %680 = vst [vmem:[%s1360_s4 + $0x40] sm:$0x3] %v668_v13  ;;  %v873_v33 = vpop.eup %872  ;;  %v645_v20 = vmul.f32 %v871_v58, %v634_v57 }
 0x130   :  { %v583_v63 = vmul.f32 0.0625, %v571_v4  ;;  %v570_v14 = vadd.f32 %v873_v33, %v474_v52  ;;  %v875_v21 = vpop.eup %874 }
 0x131   :  { %v657_v1 = vsel %vm1201_vm10, %v645_v20, %v873_v33  ;;  %v647_v28 = vmul.f32 %v875_v21, %v634_v57 }
 0x132   :  { %v670_v16 = vsel %vm551_vm15, %v583_v63, %v658_v6  ;;  %v582_v2 = vmul.f32 0.0625, %v570_v14 }
 0x133   :  { %682 = vst [vmem:[%s1360_s4 + $0x50] sm:$0x3] %v670_v16 }
 0x134   :  { %v669_v5 = vsel %vm551_vm15, %v582_v2, %v657_v1 }
 0x135   :  { %681 = vst [vmem:[%s1360_s4 + $0x48] sm:$0x3] %v669_v5 }
 0x137   :  { %v877_v23 = vpop.eup %876 }
 0x138   :  { %v572_v24 = vadd.f32 %v877_v23, %v476_v15  ;;  %v659_v30 = vsel %vm1201_vm10, %v647_v28, %v877_v23 }
 0x13a   :  { %v584_v29 = vmul.f32 0.0625, %v572_v24 }
 0x13c   :  { %v671_v0 = vsel %vm551_vm15, %v584_v29, %v659_v30 }
 0x13d   :  { %683 = vst [vmem:[%s1360_s4 + $0x58] sm:$0x3] %v671_v0 }

// kernel: _lambda_.9
= control target key start
LH: loop header
LB: loop body
LE: loop exit
PB: predicated region body
PF: predicated region fallthrough
CT: control target
= control target key end

     0   :  { %vm55_vm0 = vcmask 130048   ;;  %v277_v1 = vmov 0   ;;  %v113_v10 = vlaneseq  ;;  %s386_s1 = inlined_call_operand.vmem [shape: bf16[16,128], index: 1, kind: input, shape index: {}]   ;;  %s387_s0 = inlined_call_operand.vmem [shape: bf16[18,16], index: 0, kind: input, shape index: {}]   ;;  %s388_s2 = inlined_call_operand.vmem [shape: f32[18,1], index: 2, kind: input, shape index: {}]   ;;  %s389_s3 = inlined_call_operand.vmem [shape: f32[18,1], index: 3, kind: input, shape index: {}]   ;;  %s390_s4 = inlined_call_operand.vmem [shape: f32[18,128], index: 4, kind: output, shape index: {}]  }
   0x1   :  { %v256_v0 = vld [vmem:[%s386_s1] sm:$0xff]   ;;  %254 = vset.pattern.permute.xlu0 %v277_v1  ;;  %255 = vset.pattern.permute.xlu1 %v277_v1  ;;  %v258_v3 = vld [vmem:[%s387_s0 + $0x8] ss:$0 sps:$4 sm:$0x11]   ;;  %v25_v5 = vld [vmem:[%s388_s2 + $0x10] sm:$0x3] }
   0x2   :  { %247 = vmatprep.subr.bf16.mxu0 %v256_v0  ;;  %v257_v2 = vld [vmem:[%s387_s0] sm:$0xff]   ;;  %38 = vperm.xlu1 %255, %v25_v5   ;;  %v24_v6 = vld [vmem:[%s388_s2 + $0x8] sm:$0xff]  ;;  %v112_v9 = vld [vmem:[%s389_s3 + $0x10] sm:$0x3]  ;;  %v114_v11 = vshrl.u32 %v113_v10, 7  ;;  %v332_v19 = vand.u32 127, %v113_v10 }
   0x3   :  { %v23_v4 = vld [vmem:[%s388_s2] sm:$0xff]  ;;  %248 = vmatpush3.bf16.msra.mxu0 %v256_v0  ;;  %249 = vmatprep.mubr.msk.bf16.mxu0 %vm55_vm0, %v257_v2  ;;  %v111_v8 = vld [vmem:[%s389_s3 + $0x8] sm:$0xff] }
   0x4   :  { %28 = vperm.xlu0 %254, %v23_v4   ;;  %v110_v7 = vld [vmem:[%s389_s3] sm:$0xff]  ;;  %v116_v12 = vadd.s32 16, %v114_v11  ;;  %v115_v14 = vadd.s32 8, %v114_v11  ;;  %v117_v15 = vcvt.s32.f32 %v114_v11  ;;  %v140_v23 = vcvt.s32.f32 %v332_v19 }
   0x6   :  { %250 = vmatmul.mubr.msk.bf16.vlgmr.msra.gmra.mrb[0].mxu0 %vm55_vm0, %v258_v3  ;;  %207 = vperm.xlu1 %255, %v110_v7   ;;  %v119_v13 = vcvt.s32.f32 %v116_v12  ;;  %v118_v17 = vcvt.s32.f32 %v115_v14  ;;  %v120_v18 = vadd.f32 0.5, %v117_v15  ;;  %v143_v27 = vadd.f32 0.5, %v140_v23 }
   0x8   :  { %33 = vperm.xlu0 %254, %v24_v6   ;;  %v122_v16 = vadd.f32 0.5, %v119_v13  ;;  %v121_v21 = vadd.f32 0.5, %v118_v17  ;;  %v124_v22 = vmul.f32 0.16666667, %v120_v18  ;;  %v145_v32 = vmul.f32 0.125, %v143_v27 }
   0xa   :  { %217 = vperm.xlu1 %255, %v112_v9   ;;  %v126_v20 = vmul.f32 0.16666667, %v122_v16  ;;  %v125_v25 = vmul.f32 0.16666667, %v121_v21  ;;  %v127_v26 = vfloor.f32 %v124_v22  ;;  %v146_v41 = vfloor.f32 %v145_v32 }
   0xc   :  { %212 = vperm.xlu0 %254, %v111_v8   ;;  %v129_v24 = vfloor.f32 %v126_v20  ;;  %v128_v29 = vfloor.f32 %v125_v25  ;;  %v130_v31 = vmul.f32 6.0, %v127_v26  ;;  %v149_v49 = vadd.f32 0.5, %v146_v41 }
   0xd   :  { %v147_v1 = vmul.f32 8.0, %v146_v41 }
   0xe   :  { %v132_v28 = vmul.f32 6.0, %v129_v24  ;;  %v131_v36 = vmul.f32 6.0, %v128_v29  ;;  %v337_v40 = vsub.f32 %v117_v15, %v130_v31  ;;  %v150_v54 = vmul.f32 0.125, %v149_v49 }
   0xf   :  { %v148_v6 = vsub.f32 %v140_v23, %v147_v1 }
  0x10   :  { %v335_v33 = vsub.f32 %v119_v13, %v132_v28  ;;  %v341_v48 = vsub.f32 %v118_v17, %v131_v36  ;;  %vm181_vm3 = vcmp.gt.f32.partialorder %v337_v40, 1.5  ;;  %vm184_vm4 = vcmp.lt.f32.partialorder %v337_v40, 3.5 }
  0x11   :  { %vm351_vm8 = vmand %vm181_vm3, %vm184_vm4  ;;  %v151_v58 = vfloor.f32 %v150_v54  ;;  %vm154_vm11 = vcmp.lt.f32.partialorder %v337_v40, 0.5  ;;  %vm178_vm14 = vcmp.lt.f32.partialorder %v337_v40, 1.5 }
  0x12   :  { %vm183_vm1 = vcmp.gt.f32.partialorder %v335_v33, 1.5  ;;  %vm186_vm2 = vcmp.lt.f32.partialorder %v335_v33, 3.5  ;;  %vm182_vm6 = vcmp.gt.f32.partialorder %v341_v48, 1.5  ;;  %vm185_vm7 = vcmp.lt.f32.partialorder %v341_v48, 3.5 }
  0x13   :  { %vm345_vm5 = vmand %vm183_vm1, %vm186_vm2  ;;  %v152_v2 = vmul.f32 8.0, %v151_v58  ;;  %vm156_vm10 = vcmp.lt.f32.partialorder %v335_v33, 0.5  ;;  %vm155_vm12 = vcmp.lt.f32.partialorder %v341_v48, 0.5  ;;  %vm180_vm13 = vcmp.lt.f32.partialorder %v335_v33, 1.5 }
  0x14   :  { %vm357_vm9 = vmand %vm182_vm6, %vm185_vm7  ;;  %vm179_vm15 = vcmp.lt.f32.partialorder %v341_v48, 1.5 }
  0x15   :  { %v153_v7 = vsub.f32 %v146_v41, %v152_v2 }
  0x17   :  { %v159_v9 = vsel %vm156_vm10, %v148_v6, %v153_v7  ;;  %v157_v12 = vsel %vm154_vm11, %v148_v6, %v153_v7  ;;  %v158_v18 = vsel %vm155_vm12, %v148_v6, %v153_v7 }
  0x81   :  { %v39_v34 = vpop.permute.xlu1 %38 }
  0x83   :  { %v29_v30 = vpop.permute.xlu0 %28 }
  0x85   :  { %v208_v8 = vpop.permute.xlu1 %207 }
  0x87   :  { %v34_v43 = vpop.permute.xlu0 %33 }
  0x89   :  { %v218_v14 = vpop.permute.xlu1 %217 }
  0x8b   :  { %v213_v25 = vpop.permute.xlu0 %212 }
  0xd9   :  { %v251_v35 = vpop.f32.mrb[0].mxu0 }
  0xda   :  { %v105_v37 = vadd.f32 %v251_v35, %v39_v34  ;;  %v96_v38 = vpop.f32.mrb[1].mxu0 }
  0xdb   :  { %v97_v39 = vadd.f32 %v96_v38, %v29_v30  ;;  %v252_v42 = vpop.f32.mrb[2].mxu0 }
  0xdc   :  { %v243_v44 = vmul.f32 -1.442695, %v105_v37  ;;  %v99_v45 = vpop.f32.mrb[3].mxu0  ;;  %v198_v53 = vsel %vm345_vm5, %v105_v37, 0.0 }
  0xdd   :  { %v241_v46 = vmul.f32 -1.442695, %v97_v39  ;;  %v100_v47 = vadd.f32 %v99_v45, %v34_v43  ;;  %v196_v56 = vsel %vm351_vm8, %v97_v39, 0.0  ;;  %v203_v57 = vmul.f32 1.442695, %v198_v53 }
  0xde   :  { %259 = vpow2.f32 %v243_v44  ;;  %v199_v61 = vmul.f32 1.442695, %v196_v56 }
  0xdf   :  { %v242_v50 = vmul.f32 -1.442695, %v100_v47  ;;  %261 = vpow2.f32 %v241_v46  ;;  %v197_v59 = vsel %vm357_vm9, %v100_v47, 0.0 }
  0xe0   :  { %v201_v0 = vmul.f32 1.442695, %v197_v59 }
  0xe1   :  { %263 = vpow2.f32 %v242_v50 }
  0xe2   :  { %265 = vpow2.f32 %v203_v57 }
  0xe8   :  { %v260_v60 = vpop.eup %259 }
  0xe9   :  { %v171_v62 = vadd.f32 1.0, %v260_v60  ;;  %v262_v63 = vpop.eup %261 }
  0xea   :  { %v169_v3 = vadd.f32 1.0, %v262_v63 }
  0xeb   :  { %267 = vrcp.f32 %v171_v62  ;;  %v264_v4 = vpop.eup %263 }
  0xec   :  { %269 = vpow2.f32 %v199_v61  ;;  %v170_v5 = vadd.f32 1.0, %v264_v4  ;;  %v266_v10 = vpop.eup %265 }
  0xed   :  { %271 = vrcp.f32 %v169_v3  ;;  %v222_v17 = vmul.f32 %v266_v10, %v218_v14 }
  0xee   :  { %273 = vpow2.f32 %v201_v0 }
  0xef   :  { %275 = vrcp.f32 %v170_v5 }
  0xf5   :  { %v268_v11 = vpop.eup %267 }
  0xf6   :  { %v270_v13 = vpop.eup %269  ;;  %v192_v15 = vadd.f32 %v268_v11, %v159_v9  ;;  %v225_v24 = vsel %vm345_vm5, %v222_v17, %v268_v11 }
  0xf7   :  { %v272_v16 = vpop.eup %271  ;;  %v220_v23 = vmul.f32 %v270_v13, %v208_v8 }
  0xf8   :  { %v274_v19 = vpop.eup %273  ;;  %v190_v20 = vadd.f32 %v272_v16, %v157_v12  ;;  %v195_v21 = vmul.f32 0.125, %v192_v15 }
  0xf9   :  { %v276_v22 = vpop.eup %275  ;;  %v223_v29 = vsel %vm351_vm8, %v220_v23, %v272_v16  ;;  %v221_v30 = vmul.f32 %v274_v19, %v213_v25 }
  0xfa   :  { %v193_v26 = vmul.f32 0.125, %v190_v20  ;;  %v228_v27 = vsel %vm180_vm13, %v195_v21, %v225_v24  ;;  %v191_v28 = vadd.f32 %v276_v22, %v158_v18 }
  0xfb   :  { %231 = vst [vmem:[%s390_s4 + $0x10] sm:$0x3] %v228_v27  ;;  %v224_v33 = vsel %vm357_vm9, %v221_v30, %v276_v22 }
  0xfc   :  { %v226_v31 = vsel %vm178_vm14, %v193_v26, %v223_v29  ;;  %v194_v32 = vmul.f32 0.125, %v191_v28 }
  0xfd   :  { %229 = vst [vmem:[%s390_s4] sm:$0xff] %v226_v31 }
  0xfe   :  { %v227_v34 = vsel %vm179_vm15, %v194_v32, %v224_v33 }
  0xff   :  { %230 = vst [vmem:[%s390_s4 + $0x8] sm:$0xff] %v227_v34 }

</bundles_post_ra>
